<compile_context>
chip_gen: v7x
topology: tpu7x:2x2x1
jax: 0.10.0
libtpu: 0.0.40
codegen_flags: <defaults>
</compile_context>

<pallas_src>
import math

import jax
import jax.numpy as jnp
from jax import lax
from jax.experimental import pallas as pl
from jax.experimental.pallas import tpu as pltpu


# Scoped VMEM budget: within the v6e/v7x default (32 MiB) and leaves plenty of
# headroom on v7x (64 MiB physical).  Tiles below are sized well under this.
VMEM_LIMIT_BYTES = 32 * 1024 * 1024


def _round_tile(dim, pref, base):
    """Largest tile <= pref that divides `dim` and is a multiple of `base`
    (TPU (8,128) tiling rule); falls back to the full dim (always legal)."""
    if dim <= pref:
        return dim
    t = (pref // base) * base
    while t >= base:
        if dim % t == 0:
            return t
        t -= base
    return dim


# ----------------------------- linear (matmul) ------------------------------


def make_linear_kernel(activation, has_residual):
    def kernel(x_ref, w_ref, b_ref, *rest):
        if has_residual:
            r_ref, o_ref, acc_ref = rest
        else:
            r_ref = None
            o_ref, acc_ref = rest

        kk = pl.program_id(2)

        @pl.when(kk == 0)
        def _init():
            acc_ref[...] = jnp.zeros_like(acc_ref)

        # No upcast of operands: MXU takes native dtype, accumulates in f32.
        acc_ref[...] += jnp.dot(
            x_ref[...], w_ref[...], preferred_element_type=jnp.float32
        )

        @pl.when(kk == pl.num_programs(2) - 1)
        def _finalize():
            y = acc_ref[...] + b_ref[...].astype(jnp.float32)
            if activation == "relu":
                y = jnp.maximum(y, 0.0)
            if has_residual:
                y = y + r_ref[...].astype(jnp.float32)
            o_ref[...] = y.astype(o_ref.dtype)

    return kernel


def pallas_linear(x, w_t, b, *, activation=None, residual=None,
                  tm=256, tn=256, tk=512):
    """y = x @ w_t + b (+ residual, optional relu).  x: (M,K), w_t: (K,N)."""
    M, K = x.shape
    Kw, N = w_t.shape
    assert K == Kw, (K, Kw)

    tm = _round_tile(M, tm, 8)
    tn = _round_tile(N, tn, 128)
    tk = _round_tile(K, tk, 128)
    grid = (M // tm, N // tn, K // tk)

    in_specs = [
        pl.BlockSpec((tm, tk), lambda i, j, k: (i, k)),
        pl.BlockSpec((tk, tn), lambda i, j, k: (k, j)),
        pl.BlockSpec((1, tn), lambda i, j, k: (0, j)),
    ]
    args = [x, w_t, b.reshape(1, N)]
    if residual is not None:
        in_specs.append(pl.BlockSpec((tm, tn), lambda i, j, k: (i, j)))
        args.append(residual)

    itemsize = x.dtype.itemsize
    bytes_accessed = (M * K + K * N + N + 2 * M * N) * itemsize
    if residual is not None:
        bytes_accessed += M * N * itemsize

    return pl.pallas_call(
        make_linear_kernel(activation, residual is not None),
        out_shape=jax.ShapeDtypeStruct((M, N), x.dtype),
        grid_spec=pltpu.PrefetchScalarGridSpec(
            num_scalar_prefetch=0,
            grid=grid,
            in_specs=in_specs,
            out_specs=pl.BlockSpec((tm, tn), lambda i, j, k: (i, j)),
            scratch_shapes=[pltpu.VMEM((tm, tn), jnp.float32)],
        ),
        compiler_params=pltpu.CompilerParams(
            dimension_semantics=("parallel", "parallel", "arbitrary"),
            vmem_limit_bytes=VMEM_LIMIT_BYTES,
        ),
        cost_estimate=pl.CostEstimate(
            flops=int(2 * M * N * K),
            transcendentals=0,
            bytes_accessed=int(bytes_accessed),
        ),
    )(*args)


# -------------------------------- LayerNorm ---------------------------------


def make_layer_norm_kernel(eps, d):
    def kernel(x_ref, a_ref, b_ref, o_ref):
        x = x_ref[...].astype(jnp.float32)
        mean = jnp.mean(x, axis=-1, keepdims=True)
        xc = x - mean
        # torch.std uses Bessel's correction (divide by d - 1).
        var = jnp.sum(xc * xc, axis=-1, keepdims=True) * (1.0 / (d - 1))
        inv = lax.rsqrt(var + eps)
        y = a_ref[...].astype(jnp.float32) * (xc * inv) + b_ref[...].astype(jnp.float32)
        o_ref[...] = y.astype(o_ref.dtype)

    return kernel


def pallas_layer_norm(x, a, b, eps=1e-6):
    B, S, d = x.shape
    M = B * S
    x2 = x.reshape(M, d)
    tm = _round_tile(M, 256, 8)
    out = pl.pallas_call(
        make_layer_norm_kernel(eps, d),
        out_shape=jax.ShapeDtypeStruct((M, d), x.dtype),
        grid_spec=pltpu.PrefetchScalarGridSpec(
            num_scalar_prefetch=0,
            grid=(M // tm,),
            in_specs=[
                pl.BlockSpec((tm, d), lambda i: (i, 0)),
                pl.BlockSpec((1, d), lambda i: (0, 0)),
                pl.BlockSpec((1, d), lambda i: (0, 0)),
            ],
            out_specs=pl.BlockSpec((tm, d), lambda i: (i, 0)),
        ),
        compiler_params=pltpu.CompilerParams(
            dimension_semantics=("parallel",),
            vmem_limit_bytes=VMEM_LIMIT_BYTES,
        ),
        cost_estimate=pl.CostEstimate(
            flops=int(8 * M * d),
            transcendentals=int(M),
            bytes_accessed=int(2 * M * d * x.dtype.itemsize + 2 * d * 4),
        ),
    )(x2, a.reshape(1, d), b.reshape(1, d))
    return out.reshape(B, S, d)


# ----------------------------- attention core --------------------------------


def make_attn_kernel(heads_per_step, d_k, q_col0, k_col0, v_col0):
    scale = 1.0 / math.sqrt(d_k)

    def kernel(q_ref, k_ref, v_ref, mask_ref, o_ref):
        q = q_ref[0]            # (Sq, block_width)
        k = k_ref[0]            # (Sk, block_width)
        v = v_ref[0]            # (Sk, block_width)
        bias = mask_ref[0]      # (Mq, Sk) additive f32 (0 / -1e9)

        outs = []
        for g in range(heads_per_step):   # static unroll, static slices
            qc, kc, vc = q_col0 + g * d_k, k_col0 + g * d_k, v_col0 + g * d_k
            qg = q[:, qc:qc + d_k]
            kg = k[:, kc:kc + d_k]
            vg = v[:, vc:vc + d_k]
            # scores = qg @ kg.T  (contract last dims; no explicit transpose op)
            s = lax.dot_general(qg, kg, (((1,), (1,)), ((), ())),
                                preferred_element_type=jnp.float32)
            s = s * scale + bias
            s = s - s.max(axis=-1, keepdims=True)
            p = jnp.exp(s)
            p = p * pl.reciprocal(p.sum(axis=-1, keepdims=True), approx=True)
            outs.append(jnp.dot(p.astype(vg.dtype), vg,
                                preferred_element_type=jnp.float32))
        # One lane-dense store covering all heads of this step.
        o_ref[0] = jnp.concatenate(outs, axis=-1).astype(o_ref.dtype)

    return kernel


def pallas_mha_core(q_src, k_src, v_src, mask_bias, *, h, d_k,
                    q_head0, k_head0, v_head0):
    """Scaled-dot-product attention over head-major projection slabs.

    q_src/k_src/v_src: (B, S, n*d_model) arrays (possibly the same fused array);
    the q/k/v projections live at head offsets q_head0/k_head0/v_head0 (in heads).
    mask_bias: (B, Mq, Sk) additive f32 mask, Mq in {1, Sq}.
    Returns (B, Sq, h*d_k) in [B, S, d_model] layout (heads concatenated), so no
    transpose is needed before the output projection.
    """
    B, Sq, Dq = q_src.shape
    _, Sk, Dk = k_src.shape
    _, _, Dv = v_src.shape
    Mq = mask_bias.shape[1]
    d_model = h * d_k
    out_dtype = q_src.dtype

    blocked = (d_model % 128 == 0)
    if blocked:
        # Pack G heads per grid step so the block width is a lane-dense
        # multiple of 128 (up to 512 lanes) -- amortizes grid-step overhead
        # and keeps stores unmasked.
        g0 = 128 // math.gcd(d_k, 128)
        G = g0
        for mult in range(h // g0, 0, -1):
            if h % (mult * g0) == 0 and mult * g0 * d_k <= 512:
                G = mult * g0
                break
        W = G * d_k
        qb0, kb0, vb0 = (q_head0 * d_k) // W, (k_head0 * d_k) // W, (v_head0 * d_k) // W
        in_specs = [
            pl.BlockSpec((1, Sq, W), lambda b, g: (b, 0, qb0 + g)),
            pl.BlockSpec((1, Sk, W), lambda b, g: (b, 0, kb0 + g)),
            pl.BlockSpec((1, Sk, W), lambda b, g: (b, 0, vb0 + g)),
            pl.BlockSpec((1, Mq, Sk), lambda b, g: (b, 0, 0)),
        ]
        kernel = make_attn_kernel(G, d_k, 0, 0, 0)
    else:
        # Toy sizes (d_model < 128): full-width blocks, slice heads in-kernel.
        G = h
        W = d_model
        in_specs = [
            pl.BlockSpec((1, Sq, Dq), lambda b, g: (b, 0, 0)),
            pl.BlockSpec((1, Sk, Dk), lambda b, g: (b, 0, 0)),
            pl.BlockSpec((1, Sk, Dv), lambda b, g: (b, 0, 0)),
            pl.BlockSpec((1, Mq, Sk), lambda b, g: (b, 0, 0)),
        ]
        kernel = make_attn_kernel(G, d_k, q_head0 * d_k, k_head0 * d_k, v_head0 * d_k)

    grid = (B, h // G)
    itemsize = q_src.dtype.itemsize
    flops = B * h * (4 * Sq * Sk * d_k + 6 * Sq * Sk)
    bytes_accessed = (q_src.size + k_src.size + v_src.size) * itemsize \
        + mask_bias.size * 4 + B * Sq * d_model * itemsize

    return pl.pallas_call(
        kernel,
        out_shape=jax.ShapeDtypeStruct((B, Sq, d_model), out_dtype),
        grid_spec=pltpu.PrefetchScalarGridSpec(
            num_scalar_prefetch=0,
            grid=grid,
            in_specs=in_specs,
            out_specs=pl.BlockSpec((1, Sq, W), lambda b, g: (b, 0, g)),
        ),
        compiler_params=pltpu.CompilerParams(
            dimension_semantics=("parallel", "parallel"),
            vmem_limit_bytes=VMEM_LIMIT_BYTES,
        ),
        cost_estimate=pl.CostEstimate(
            flops=int(flops),
            transcendentals=int(B * h * Sq * Sk),
            bytes_accessed=int(bytes_accessed),
        ),
    )(q_src, k_src, v_src, mask_bias)


# ------------------------------ decoder layer --------------------------------


def mask_to_bias(mask, batch, sk):
    """1/0 keep-mask -> additive f32 bias (0 keep / -1e9 masked)."""
    if mask is None:
        return jnp.zeros((batch, 1, sk), jnp.float32)
    return jnp.where(mask == 0, -1e9, 0.0).astype(jnp.float32)


def decoder_layer_forward(params, h, x, memory, src_mask, tgt_mask):
    """Pallas forward matching DecoderLayer.forward (eval mode, pre-norm)."""
    B, Sq, d_model = x.shape
    Sm = memory.shape[1]
    d_k = d_model // h

    tgt_bias = mask_to_bias(tgt_mask, B, Sq)
    src_bias = mask_to_bias(src_mask, B, Sm)

    ln = params["ln"]
    sa, ca, ff = params["self_attn"], params["src_attn"], params["ff"]

    # -- sublayer 0: self attention --------------------------------------
    n0 = pallas_layer_norm(x, ln[0][0], ln[0][1])
    qkv = pallas_linear(n0.reshape(B * Sq, d_model), sa["wqkv"], sa["bqkv"])
    qkv = qkv.reshape(B, Sq, 3 * d_model)
    attn0 = pallas_mha_core(qkv, qkv, qkv, tgt_bias, h=h, d_k=d_k,
                            q_head0=0, k_head0=h, v_head0=2 * h)
    x1 = pallas_linear(attn0.reshape(B * Sq, d_model), sa["wo"], sa["bo"],
                       residual=x.reshape(B * Sq, d_model)
                       ).reshape(B, Sq, d_model)

    # -- sublayer 1: cross attention --------------------------------------
    n1 = pallas_layer_norm(x1, ln[1][0], ln[1][1])
    q = pallas_linear(n1.reshape(B * Sq, d_model), ca["wq"], ca["bq"]
                      ).reshape(B, Sq, d_model)
    kv = pallas_linear(memory.reshape(B * Sm, d_model), ca["wkv"], ca["bkv"]
                       ).reshape(B, Sm, 2 * d_model)
    attn1 = pallas_mha_core(q, kv, kv, src_bias, h=h, d_k=d_k,
                            q_head0=0, k_head0=0, v_head0=h)
    x2 = pallas_linear(attn1.reshape(B * Sq, d_model), ca["wo"], ca["bo"],
                       residual=x1.reshape(B * Sq, d_model)
                       ).reshape(B, Sq, d_model)

    # -- sublayer 2: feed forward ------------------------------------------
    n2 = pallas_layer_norm(x2, ln[2][0], ln[2][1])
    hdn = pallas_linear(n2.reshape(B * Sq, d_model), ff["w1"], ff["b1"],
                        activation="relu")
    x3 = pallas_linear(hdn, ff["w2"], ff["b2"],
                       residual=x2.reshape(B * Sq, d_model)
                       ).reshape(B, Sq, d_model)
    # TODO(synk): dropout is identity (eval mode).
    return x3


# ------------------------------- parameters ----------------------------------


def init_decoder_params(key, h, d_model, d_ff, dtype=jnp.float32):
    """All linear weights are stored PRE-TRANSPOSED (fan_in, fan_out)."""

    def linear_params(k, fan_in, fan_out):
        kw, kb = jax.random.split(k)
        bound = 1.0 / math.sqrt(fan_in)
        w_t = jax.random.uniform(kw, (fan_in, fan_out), dtype, -bound, bound)
        b = jax.random.uniform(kb, (fan_out,), dtype, -bound, bound)
        return w_t, b

    keys = jax.random.split(key, 10)
    wqkv, bqkv = linear_params(keys[0], d_model, 3 * d_model)   # fused Q|K|V
    wo0, bo0 = linear_params(keys[1], d_model, d_model)
    wq, bq = linear_params(keys[2], d_model, d_model)
    wkv, bkv = linear_params(keys[3], d_model, 2 * d_model)     # fused K|V
    wo1, bo1 = linear_params(keys[4], d_model, d_model)
    w1, b1 = linear_params(keys[5], d_model, d_ff)
    w2, b2 = linear_params(keys[6], d_ff, d_model)

    ln = []
    for i in range(3):
        ka, kb = jax.random.split(keys[7 + i])
        a = 1.0 + 0.1 * jax.random.normal(ka, (d_model,), dtype)
        b = 0.1 * jax.random.normal(kb, (d_model,), dtype)
        ln.append((a, b))

    return {
        "self_attn": {"wqkv": wqkv, "bqkv": bqkv, "wo": wo0, "bo": bo0},
        "src_attn": {"wq": wq, "bq": bq, "wkv": wkv, "bkv": bkv,
                     "wo": wo1, "bo": bo1},
        "ff": {"w1": w1, "b1": b1, "w2": w2, "b2": b2},
        "ln": ln,
    }


# -------------------------------- reference ----------------------------------


_HI = jax.lax.Precision.HIGHEST


def ref_layer_norm(x, a, b, eps=1e-6):
    mean = x.mean(-1, keepdims=True)
    var = ((x - mean) ** 2).sum(-1, keepdims=True) / (x.shape[-1] - 1)  # unbiased
    std = jnp.sqrt(var)
    return a * ((x - mean) / jnp.sqrt(std ** 2 + eps)) + b


def ref_attention(q, k, v, mask_bias, h):
    B, Sq, d_model = q.shape
    Sk = k.shape[1]
    d_k = d_model // h
    qh = q.reshape(B, Sq, h, d_k).transpose(0, 2, 1, 3)
    kh = k.reshape(B, Sk, h, d_k).transpose(0, 2, 1, 3)
    vh = v.reshape(B, Sk, h, d_k).transpose(0, 2, 1, 3)
    s = jnp.einsum("bhqd,bhkd->bhqk", qh, kh, precision=_HI) / math.sqrt(d_k)
    s = s + mask_bias[:, None]
    p = jax.nn.softmax(s, axis=-1)
    o = jnp.einsum("bhqk,bhkd->bhqd", p, vh, precision=_HI)
    return o.transpose(0, 2, 1, 3).reshape(B, Sq, d_model)


def ref_decoder_layer(params, h, x, memory, src_mask, tgt_mask):
    B, Sq, d_model = x.shape
    Sm = memory.shape[1]
    tgt_bias = mask_to_bias(tgt_mask, B, Sq)
    src_bias = mask_to_bias(src_mask, B, Sm)
    ln = params["ln"]
    sa, ca, ff = params["self_attn"], params["src_attn"], params["ff"]

    def lin(t, w_t, b):
        return jnp.dot(t, w_t, precision=_HI) + b

    n0 = ref_layer_norm(x, ln[0][0], ln[0][1])
    qkv = lin(n0, sa["wqkv"], sa["bqkv"])
    q, k, v = (qkv[..., :d_model], qkv[..., d_model:2 * d_model],
               qkv[..., 2 * d_model:])
    x1 = x + lin(ref_attention(q, k, v, tgt_bias, h), sa["wo"], sa["bo"])

    n1 = ref_layer_norm(x1, ln[1][0], ln[1][1])
    q = lin(n1, ca["wq"], ca["bq"])
    kv = lin(memory, ca["wkv"], ca["bkv"])
    k, v = kv[..., :d_model], kv[..., d_model:]
    x2 = x1 + lin(ref_attention(q, k, v, src_bias, h), ca["wo"], ca["bo"])

    n2 = ref_layer_norm(x2, ln[2][0], ln[2][1])
    hdn = jnp.maximum(lin(n2, ff["w1"], ff["b1"]), 0.0)
    x3 = x2 + lin(hdn, ff["w2"], ff["b2"])
    return x3


# ----------------------------------- main -------------------------------------


if __name__ == "__main__":

    def run_case(B, S, h, d_model, d_ff, key):
        kx, km_, kp = jax.random.split(key, 3)
        x = jax.random.normal(kx, (B, S, d_model), jnp.float32)
        memory = jax.random.normal(km_, (B, S, d_model), jnp.float32)

        # src padding mask (B, 1, S): keep first S-2 positions.
        src_mask = jnp.broadcast_to(
            (jnp.arange(S) < S - 2)[None, None, :], (B, 1, S)).astype(jnp.int32)
        # tgt mask (B, S, S): causal & keep first S-1 positions.
        causal = jnp.tril(jnp.ones((S, S), jnp.int32))
        tgt_pad = (jnp.arange(S) < S - 1).astype(jnp.int32)
        tgt_mask = jnp.broadcast_to(causal[None] * tgt_pad[None, None, :],
                                    (B, S, S))

        params = init_decoder_params(kp, h, d_model, d_ff)

        fwd = jax.jit(
            lambda p, xx, mm, sm, tm: decoder_layer_forward(p, h, xx, mm, sm, tm))
        out = jax.block_until_ready(fwd(params, x, memory, src_mask, tgt_mask))
        ref = ref_decoder_layer(params, h, x, memory, src_mask, tgt_mask)

        assert out.shape == (B, S, d_model)
        assert bool(jnp.all(jnp.isfinite(out)))
        # Tolerance covers the approx (EUP) reciprocal in the softmax epilogue.
        assert jnp.allclose(out, ref, atol=5e-3, rtol=5e-3), (
            "mismatch vs reference: max |diff| = "
            f"{float(jnp.max(jnp.abs(out - ref)))}")

    # Toy config (full-array blocks, d_model < 128 path).
    run_case(B=2, S=8, h=4, d_model=32, d_ff=128, key=jax.random.PRNGKey(0))
    # Lane-aligned config (128-wide head-packed attention blocks, tiled N and
    # K-accumulated FFN linear).
    run_case(B=2, S=16, h=4, d_model=128, d_ff=640, key=jax.random.PRNGKey(0))

    print("KERNEL_OK")
</pallas_src>

<mosaic_0001>
module attributes {stable_mosaic.version = 11 : i64} {
  func.func @kernel(%arg0: i32, %arg1: memref<16x32xf32, #tpu.memory_space<vmem>>, %arg2: memref<1x32xf32, #tpu.memory_space<vmem>>, %arg3: memref<1x32xf32, #tpu.memory_space<vmem>>, %arg4: memref<16x32xf32, #tpu.memory_space<vmem>>) attributes {dimension_semantics = [#tpu.dimension_semantics<parallel>], iteration_bounds = array<i64: 1>, scalar_prefetch = 0 : i64, scratch_operands = 0 : i64, tpu.core_type = #tpu.core_type<tc>, window_params = [{transform_indices = @transform_0, window_bounds = array<i64: 16, 32>}, {pipeline_mode = #tpu.pipeline_mode<synchronous>, transform_indices = @transform_1, window_bounds = array<i64: 1, 32>}, {pipeline_mode = #tpu.pipeline_mode<synchronous>, transform_indices = @transform_2, window_bounds = array<i64: 1, 32>}, {transform_indices = @transform_3, window_bounds = array<i64: 16, 32>}]} {
    %c0 = arith.constant 0 : index
    %c0_0 = arith.constant 0 : index
    %0 = vector.load %arg1[%c0, %c0_0] : memref<16x32xf32, #tpu.memory_space<vmem>>, vector<16x32xf32>
    %cst = arith.constant dense<0.000000e+00> : vector<16xf32>
    %1 = vector.multi_reduction <add>, %0, %cst [1] : vector<16x32xf32> to vector<16xf32>
    %2 = vector.shape_cast %1 : vector<16xf32> to vector<16x1xf32>
    %cst_1 = arith.constant 3.200000e+01 : f32
    %3 = vector.broadcast %cst_1 : f32 to vector<16x1xf32>
    %4 = arith.divf %2, %3 : vector<16x1xf32>
    %5 = vector.broadcast %4 : vector<16x1xf32> to vector<16x32xf32>
    %6 = arith.subf %0, %5 : vector<16x32xf32>
    %7 = arith.mulf %6, %6 : vector<16x32xf32>
    %cst_2 = arith.constant dense<0.000000e+00> : vector<16xf32>
    %8 = vector.multi_reduction <add>, %7, %cst_2 [1] : vector<16x32xf32> to vector<16xf32>
    %9 = vector.shape_cast %8 : vector<16xf32> to vector<16x1xf32>
    %cst_3 = arith.constant 0.0322580636 : f32
    %10 = vector.broadcast %cst_3 : f32 to vector<16x1xf32>
    %11 = arith.mulf %9, %10 : vector<16x1xf32>
    %cst_4 = arith.constant 9.99999997E-7 : f32
    %12 = vector.broadcast %cst_4 : f32 to vector<16x1xf32>
    %13 = arith.addf %11, %12 : vector<16x1xf32>
    %14 = math.rsqrt %13 : vector<16x1xf32>
    %c0_5 = arith.constant 0 : index
    %c0_6 = arith.constant 0 : index
    %15 = vector.load %arg2[%c0_5, %c0_6] : memref<1x32xf32, #tpu.memory_space<vmem>>, vector<1x32xf32>
    %16 = vector.broadcast %14 : vector<16x1xf32> to vector<16x32xf32>
    %17 = arith.mulf %6, %16 : vector<16x32xf32>
    %18 = vector.broadcast %15 : vector<1x32xf32> to vector<16x32xf32>
    %19 = arith.mulf %18, %17 : vector<16x32xf32>
    %c0_7 = arith.constant 0 : index
    %c0_8 = arith.constant 0 : index
    %20 = vector.load %arg3[%c0_7, %c0_8] : memref<1x32xf32, #tpu.memory_space<vmem>>, vector<1x32xf32>
    %21 = vector.broadcast %20 : vector<1x32xf32> to vector<16x32xf32>
    %22 = arith.addf %19, %21 : vector<16x32xf32>
    %c0_9 = arith.constant 0 : index
    %c0_10 = arith.constant 0 : index
    %23 = vector.load %arg4[%c0_9, %c0_10] : memref<16x32xf32, #tpu.memory_space<vmem>>, vector<16x32xf32>
    tpu.vector_store %arg4[%c0_9, %c0_10], %22 {strides = array<i32>} : memref<16x32xf32, #tpu.memory_space<vmem>>, vector<16x32xf32>,
    return
  }
  func.func @transform_0(%arg0: i32) -> (i32, i32) {
    %c0_i32 = arith.constant 0 : i32
    %c0_i32_0 = arith.constant 0 : i32
    return %arg0, %c0_i32 : i32, i32
  }
  func.func @transform_1(%arg0: i32) -> (i32, i32) {
    %c0_i32 = arith.constant 0 : i32
    %c0_i32_0 = arith.constant 0 : i32
    %c0_i32_1 = arith.constant 0 : i32
    return %c0_i32, %c0_i32_0 : i32, i32
  }
  func.func @transform_2(%arg0: i32) -> (i32, i32) {
    %c0_i32 = arith.constant 0 : i32
    %c0_i32_0 = arith.constant 0 : i32
    %c0_i32_1 = arith.constant 0 : i32
    return %c0_i32, %c0_i32_0 : i32, i32
  }
  func.func @transform_3(%arg0: i32) -> (i32, i32) {
    %c0_i32 = arith.constant 0 : i32
    %c0_i32_0 = arith.constant 0 : i32
    return %arg0, %c0_i32 : i32, i32
  }
}

module attributes {stable_mosaic.version = 11 : i64} {
  func.func @kernel(%arg0: i32, %arg1: i32, %arg2: i32, %arg3: memref<16x32xf32, #tpu.memory_space<vmem>>, %arg4: memref<32x96xf32, #tpu.memory_space<vmem>>, %arg5: memref<1x96xf32, #tpu.memory_space<vmem>>, %arg6: memref<16x96xf32, #tpu.memory_space<vmem>>, %arg7: memref<16x96xf32, #tpu.memory_space<vmem>>) attributes {dimension_semantics = [#tpu.dimension_semantics<parallel>, #tpu.dimension_semantics<parallel>, #tpu.dimension_semantics<arbitrary>], iteration_bounds = array<i64: 1, 1, 1>, scalar_prefetch = 0 : i64, scratch_operands = 1 : i64, tpu.core_type = #tpu.core_type<tc>, window_params = [{transform_indices = @transform_0, window_bounds = array<i64: 16, 32>}, {transform_indices = @transform_1, window_bounds = array<i64: 32, 96>}, {transform_indices = @transform_2, window_bounds = array<i64: 1, 96>}, {transform_indices = @transform_3, window_bounds = array<i64: 16, 96>}]} {
    %c0_i32 = arith.constant 0 : i32
    %0 = arith.cmpi eq, %arg2, %c0_i32 : i32
    %1 = arith.extui %0 : i1 to i32
    %c0_i32_0 = arith.constant 0 : i32
    %2 = arith.cmpi ne, %1, %c0_i32_0 : i32
    scf.if %2 {
      %cst_10 = arith.constant 0.000000e+00 : f32
      %12 = vector.broadcast %cst_10 : f32 to vector<16x96xf32>
      %c0_11 = arith.constant 0 : index
      %c0_12 = arith.constant 0 : index
      %13 = vector.load %arg7[%c0_11, %c0_12] : memref<16x96xf32, #tpu.memory_space<vmem>>, vector<16x96xf32>
      tpu.vector_store %arg7[%c0_11, %c0_12], %12 {strides = array<i32>} : memref<16x96xf32, #tpu.memory_space<vmem>>, vector<16x96xf32>,
    } else {
    }
    %c0 = arith.constant 0 : index
    %c0_1 = arith.constant 0 : index
    %3 = vector.load %arg7[%c0, %c0_1] : memref<16x96xf32, #tpu.memory_space<vmem>>, vector<16x96xf32>
    %c0_2 = arith.constant 0 : index
    %c0_3 = arith.constant 0 : index
    %4 = vector.load %arg3[%c0_2, %c0_3] : memref<16x32xf32, #tpu.memory_space<vmem>>, vector<16x32xf32>
    %c0_4 = arith.constant 0 : index
    %c0_5 = arith.constant 0 : index
    %5 = vector.load %arg4[%c0_4, %c0_5] : memref<32x96xf32, #tpu.memory_space<vmem>>, vector<32x96xf32>
    %cst = arith.constant dense<0.000000e+00> : vector<16x96xf32>
    %6 = tpu.matmul %4, %5, %cst {dimension_numbers = #tpu.dot_dimension_numbers<[1], [0], [0], [1], [0, 0, 1, 1], [], []>} : vector<16x32xf32>, vector<32x96xf32>, vector<16x96xf32> -> vector<16x96xf32>
    %7 = arith.addf %3, %6 : vector<16x96xf32>
    %c0_6 = arith.constant 0 : index
    %c0_7 = arith.constant 0 : index
    %8 = vector.load %arg7[%c0_6, %c0_7] : memref<16x96xf32, #tpu.memory_space<vmem>>, vector<16x96xf32>
    tpu.vector_store %arg7[%c0_6, %c0_7], %7 {strides = array<i32>} : memref<16x96xf32, #tpu.memory_space<vmem>>, vector<16x96xf32>,
    %c0_i32_8 = arith.constant 0 : i32
    %9 = arith.cmpi eq, %arg2, %c0_i32_8 : i32
    %10 = arith.extui %9 : i1 to i32
    %c0_i32_9 = arith.constant 0 : i32
    %11 = arith.cmpi ne, %10, %c0_i32_9 : i32
    scf.if %11 {
      %c0_10 = arith.constant 0 : index
      %c0_11 = arith.constant 0 : index
      %12 = vector.load %arg7[%c0_10, %c0_11] : memref<16x96xf32, #tpu.memory_space<vmem>>, vector<16x96xf32>
      %c0_12 = arith.constant 0 : index
      %c0_13 = arith.constant 0 : index
      %13 = vector.load %arg5[%c0_12, %c0_13] : memref<1x96xf32, #tpu.memory_space<vmem>>, vector<1x96xf32>
      %14 = vector.broadcast %13 : vector<1x96xf32> to vector<16x96xf32>
      %15 = arith.addf %12, %14 : vector<16x96xf32>
      %c0_14 = arith.constant 0 : index
      %c0_15 = arith.constant 0 : index
      %16 = vector.load %arg6[%c0_14, %c0_15] : memref<16x96xf32, #tpu.memory_space<vmem>>, vector<16x96xf32>
      tpu.vector_store %arg6[%c0_14, %c0_15], %15 {strides = array<i32>} : memref<16x96xf32, #tpu.memory_space<vmem>>, vector<16x96xf32>,
    } else {
    }
    return
  }
  func.func @transform_0(%arg0: i32, %arg1: i32, %arg2: i32) -> (i32, i32) {
    %c0_i32 = arith.constant 0 : i32
    return %arg0, %arg2 : i32, i32
  }
  func.func @transform_1(%arg0: i32, %arg1: i32, %arg2: i32) -> (i32, i32) {
    %c0_i32 = arith.constant 0 : i32
    return %arg2, %arg1 : i32, i32
  }
  func.func @transform_2(%arg0: i32, %arg1: i32, %arg2: i32) -> (i32, i32) {
    %c0_i32 = arith.constant 0 : i32
    %c0_i32_0 = arith.constant 0 : i32
    return %c0_i32, %arg1 : i32, i32
  }
  func.func @transform_3(%arg0: i32, %arg1: i32, %arg2: i32) -> (i32, i32) {
    %c0_i32 = arith.constant 0 : i32
    return %arg0, %arg1 : i32, i32
  }
}

module attributes {stable_mosaic.version = 11 : i64} {
  func.func @kernel(%arg0: i32, %arg1: i32, %arg2: i32, %arg3: memref<16x32xf32, #tpu.memory_space<vmem>>, %arg4: memref<32x64xf32, #tpu.memory_space<vmem>>, %arg5: memref<1x64xf32, #tpu.memory_space<vmem>>, %arg6: memref<16x64xf32, #tpu.memory_space<vmem>>, %arg7: memref<16x64xf32, #tpu.memory_space<vmem>>) attributes {dimension_semantics = [#tpu.dimension_semantics<parallel>, #tpu.dimension_semantics<parallel>, #tpu.dimension_semantics<arbitrary>], iteration_bounds = array<i64: 1, 1, 1>, scalar_prefetch = 0 : i64, scratch_operands = 1 : i64, tpu.core_type = #tpu.core_type<tc>, window_params = [{transform_indices = @transform_0, window_bounds = array<i64: 16, 32>}, {transform_indices = @transform_1, window_bounds = array<i64: 32, 64>}, {transform_indices = @transform_2, window_bounds = array<i64: 1, 64>}, {transform_indices = @transform_3, window_bounds = array<i64: 16, 64>}]} {
    %c0_i32 = arith.constant 0 : i32
    %0 = arith.cmpi eq, %arg2, %c0_i32 : i32
    %1 = arith.extui %0 : i1 to i32
    %c0_i32_0 = arith.constant 0 : i32
    %2 = arith.cmpi ne, %1, %c0_i32_0 : i32
    scf.if %2 {
      %cst_10 = arith.constant 0.000000e+00 : f32
      %12 = vector.broadcast %cst_10 : f32 to vector<16x64xf32>
      %c0_11 = arith.constant 0 : index
      %c0_12 = arith.constant 0 : index
      %13 = vector.load %arg7[%c0_11, %c0_12] : memref<16x64xf32, #tpu.memory_space<vmem>>, vector<16x64xf32>
      tpu.vector_store %arg7[%c0_11, %c0_12], %12 {strides = array<i32>} : memref<16x64xf32, #tpu.memory_space<vmem>>, vector<16x64xf32>,
    } else {
    }
    %c0 = arith.constant 0 : index
    %c0_1 = arith.constant 0 : index
    %3 = vector.load %arg7[%c0, %c0_1] : memref<16x64xf32, #tpu.memory_space<vmem>>, vector<16x64xf32>
    %c0_2 = arith.constant 0 : index
    %c0_3 = arith.constant 0 : index
    %4 = vector.load %arg3[%c0_2, %c0_3] : memref<16x32xf32, #tpu.memory_space<vmem>>, vector<16x32xf32>
    %c0_4 = arith.constant 0 : index
    %c0_5 = arith.constant 0 : index
    %5 = vector.load %arg4[%c0_4, %c0_5] : memref<32x64xf32, #tpu.memory_space<vmem>>, vector<32x64xf32>
    %cst = arith.constant dense<0.000000e+00> : vector<16x64xf32>
    %6 = tpu.matmul %4, %5, %cst {dimension_numbers = #tpu.dot_dimension_numbers<[1], [0], [0], [1], [0, 0, 1, 1], [], []>} : vector<16x32xf32>, vector<32x64xf32>, vector<16x64xf32> -> vector<16x64xf32>
    %7 = arith.addf %3, %6 : vector<16x64xf32>
    %c0_6 = arith.constant 0 : index
    %c0_7 = arith.constant 0 : index
    %8 = vector.load %arg7[%c0_6, %c0_7] : memref<16x64xf32, #tpu.memory_space<vmem>>, vector<16x64xf32>
    tpu.vector_store %arg7[%c0_6, %c0_7], %7 {strides = array<i32>} : memref<16x64xf32, #tpu.memory_space<vmem>>, vector<16x64xf32>,
    %c0_i32_8 = arith.constant 0 : i32
    %9 = arith.cmpi eq, %arg2, %c0_i32_8 : i32
    %10 = arith.extui %9 : i1 to i32
    %c0_i32_9 = arith.constant 0 : i32
    %11 = arith.cmpi ne, %10, %c0_i32_9 : i32
    scf.if %11 {
      %c0_10 = arith.constant 0 : index
      %c0_11 = arith.constant 0 : index
      %12 = vector.load %arg7[%c0_10, %c0_11] : memref<16x64xf32, #tpu.memory_space<vmem>>, vector<16x64xf32>
      %c0_12 = arith.constant 0 : index
      %c0_13 = arith.constant 0 : index
      %13 = vector.load %arg5[%c0_12, %c0_13] : memref<1x64xf32, #tpu.memory_space<vmem>>, vector<1x64xf32>
      %14 = vector.broadcast %13 : vector<1x64xf32> to vector<16x64xf32>
      %15 = arith.addf %12, %14 : vector<16x64xf32>
      %c0_14 = arith.constant 0 : index
      %c0_15 = arith.constant 0 : index
      %16 = vector.load %arg6[%c0_14, %c0_15] : memref<16x64xf32, #tpu.memory_space<vmem>>, vector<16x64xf32>
      tpu.vector_store %arg6[%c0_14, %c0_15], %15 {strides = array<i32>} : memref<16x64xf32, #tpu.memory_space<vmem>>, vector<16x64xf32>,
    } else {
    }
    return
  }
  func.func @transform_0(%arg0: i32, %arg1: i32, %arg2: i32) -> (i32, i32) {
    %c0_i32 = arith.constant 0 : i32
    return %arg0, %arg2 : i32, i32
  }
  func.func @transform_1(%arg0: i32, %arg1: i32, %arg2: i32) -> (i32, i32) {
    %c0_i32 = arith.constant 0 : i32
    return %arg2, %arg1 : i32, i32
  }
  func.func @transform_2(%arg0: i32, %arg1: i32, %arg2: i32) -> (i32, i32) {
    %c0_i32 = arith.constant 0 : i32
    %c0_i32_0 = arith.constant 0 : i32
    return %c0_i32, %arg1 : i32, i32
  }
  func.func @transform_3(%arg0: i32, %arg1: i32, %arg2: i32) -> (i32, i32) {
    %c0_i32 = arith.constant 0 : i32
    return %arg0, %arg1 : i32, i32
  }
}

module attributes {stable_mosaic.version = 11 : i64} {
  func.func @kernel(%arg0: i32, %arg1: i32, %arg2: memref<1x8x96xf32, #tpu.memory_space<vmem>>, %arg3: memref<1x8x96xf32, #tpu.memory_space<vmem>>, %arg4: memref<1x8x96xf32, #tpu.memory_space<vmem>>, %arg5: memref<1x8x8xf32, #tpu.memory_space<vmem>>, %arg6: memref<1x8x32xf32, #tpu.memory_space<vmem>>) attributes {dimension_semantics = [#tpu.dimension_semantics<parallel>, #tpu.dimension_semantics<parallel>], iteration_bounds = array<i64: 2, 1>, scalar_prefetch = 0 : i64, scratch_operands = 0 : i64, tpu.core_type = #tpu.core_type<tc>, window_params = [{transform_indices = @transform_0, window_bounds = array<i64: 1, 8, 96>}, {transform_indices = @transform_1, window_bounds = array<i64: 1, 8, 96>}, {transform_indices = @transform_2, window_bounds = array<i64: 1, 8, 96>}, {transform_indices = @transform_3, window_bounds = array<i64: 1, 8, 8>}, {transform_indices = @transform_4, window_bounds = array<i64: 1, 8, 32>}]} {
    %c0 = arith.constant 0 : index
    %c0_0 = arith.constant 0 : index
    %c0_1 = arith.constant 0 : index
    %0 = vector.load %arg2[%c0, %c0_0, %c0_1] : memref<1x8x96xf32, #tpu.memory_space<vmem>>, vector<1x8x96xf32>
    %1 = vector.shape_cast %0 : vector<1x8x96xf32> to vector<8x96xf32>
    %c0_2 = arith.constant 0 : index
    %c0_3 = arith.constant 0 : index
    %c0_4 = arith.constant 0 : index
    %2 = vector.load %arg3[%c0_2, %c0_3, %c0_4] : memref<1x8x96xf32, #tpu.memory_space<vmem>>, vector<1x8x96xf32>
    %3 = vector.shape_cast %2 : vector<1x8x96xf32> to vector<8x96xf32>
    %c0_5 = arith.constant 0 : index
    %c0_6 = arith.constant 0 : index
    %c0_7 = arith.constant 0 : index
    %4 = vector.load %arg4[%c0_5, %c0_6, %c0_7] : memref<1x8x96xf32, #tpu.memory_space<vmem>>, vector<1x8x96xf32>
    %5 = vector.shape_cast %4 : vector<1x8x96xf32> to vector<8x96xf32>
    %c0_8 = arith.constant 0 : index
    %c0_9 = arith.constant 0 : index
    %c0_10 = arith.constant 0 : index
    %6 = vector.load %arg5[%c0_8, %c0_9, %c0_10] : memref<1x8x8xf32, #tpu.memory_space<vmem>>, vector<1x8x8xf32>
    %7 = vector.shape_cast %6 : vector<1x8x8xf32> to vector<8x8xf32>
    %8 = vector.extract_strided_slice %1 {offsets = [0, 0], sizes = [8, 8], strides = [1, 1]} : vector<8x96xf32> to vector<8x8xf32>
    %9 = vector.extract_strided_slice %3 {offsets = [0, 32], sizes = [8, 8], strides = [1, 1]} : vector<8x96xf32> to vector<8x8xf32>
    %10 = vector.extract_strided_slice %5 {offsets = [0, 64], sizes = [8, 8], strides = [1, 1]} : vector<8x96xf32> to vector<8x8xf32>
    %cst = arith.constant dense<0.000000e+00> : vector<8x8xf32>
    %11 = tpu.matmul %8, %9, %cst {dimension_numbers = #tpu.dot_dimension_numbers<[1], [1], [0], [0], [0, 0, 1, 0], [], []>} : vector<8x8xf32>, vector<8x8xf32>, vector<8x8xf32> -> vector<8x8xf32>
    %cst_11 = arith.constant 0.353553385 : f32
    %12 = vector.broadcast %cst_11 : f32 to vector<8x8xf32>
    %13 = arith.mulf %11, %12 : vector<8x8xf32>
    %14 = arith.addf %13, %7 : vector<8x8xf32>
    %cst_12 = arith.constant dense<0xFF800000> : vector<8xf32>
    %15 = vector.multi_reduction <maximumf>, %14, %cst_12 [1] : vector<8x8xf32> to vector<8xf32>
    %16 = vector.shape_cast %15 : vector<8xf32> to vector<8x1xf32>
    %17 = vector.broadcast %16 : vector<8x1xf32> to vector<8x8xf32>
    %18 = arith.subf %14, %17 : vector<8x8xf32>
    %19 = math.exp %18 : vector<8x8xf32>
    %cst_13 = arith.constant dense<0.000000e+00> : vector<8xf32>
    %20 = vector.multi_reduction <add>, %19, %cst_13 [1] : vector<8x8xf32> to vector<8xf32>
    %21 = vector.shape_cast %20 : vector<8xf32> to vector<8x1xf32>
    %22 = tpu.reciprocal %21 {approx = true} : vector<8x1xf32> -> vector<8x1xf32>
    %23 = vector.broadcast %22 : vector<8x1xf32> to vector<8x8xf32>
    %24 = arith.mulf %19, %23 : vector<8x8xf32>
    %cst_14 = arith.constant dense<0.000000e+00> : vector<8x8xf32>
    %25 = tpu.matmul %24, %10, %cst_14 {dimension_numbers = #tpu.dot_dimension_numbers<[1], [0], [0], [1], [0, 0, 1, 1], [], []>} : vector<8x8xf32>, vector<8x8xf32>, vector<8x8xf32> -> vector<8x8xf32>
    %26 = vector.extract_strided_slice %1 {offsets = [0, 8], sizes = [8, 8], strides = [1, 1]} : vector<8x96xf32> to vector<8x8xf32>
    %27 = vector.extract_strided_slice %3 {offsets = [0, 40], sizes = [8, 8], strides = [1, 1]} : vector<8x96xf32> to vector<8x8xf32>
    %28 = vector.extract_strided_slice %5 {offsets = [0, 72], sizes = [8, 8], strides = [1, 1]} : vector<8x96xf32> to vector<8x8xf32>
    %cst_15 = arith.constant dense<0.000000e+00> : vector<8x8xf32>
    %29 = tpu.matmul %26, %27, %cst_15 {dimension_numbers = #tpu.dot_dimension_numbers<[1], [1], [0], [0], [0, 0, 1, 0], [], []>} : vector<8x8xf32>, vector<8x8xf32>, vector<8x8xf32> -> vector<8x8xf32>
    %cst_16 = arith.constant 0.353553385 : f32
    %30 = vector.broadcast %cst_16 : f32 to vector<8x8xf32>
    %31 = arith.mulf %29, %30 : vector<8x8xf32>
    %32 = arith.addf %31, %7 : vector<8x8xf32>
    %cst_17 = arith.constant dense<0xFF800000> : vector<8xf32>
    %33 = vector.multi_reduction <maximumf>, %32, %cst_17 [1] : vector<8x8xf32> to vector<8xf32>
    %34 = vector.shape_cast %33 : vector<8xf32> to vector<8x1xf32>
    %35 = vector.broadcast %34 : vector<8x1xf32> to vector<8x8xf32>
    %36 = arith.subf %32, %35 : vector<8x8xf32>
    %37 = math.exp %36 : vector<8x8xf32>
    %cst_18 = arith.constant dense<0.000000e+00> : vector<8xf32>
    %38 = vector.multi_reduction <add>, %37, %cst_18 [1] : vector<8x8xf32> to vector<8xf32>
    %39 = vector.shape_cast %38 : vector<8xf32> to vector<8x1xf32>
    %40 = tpu.reciprocal %39 {approx = true} : vector<8x1xf32> -> vector<8x1xf32>
    %41 = vector.broadcast %40 : vector<8x1xf32> to vector<8x8xf32>
    %42 = arith.mulf %37, %41 : vector<8x8xf32>
    %cst_19 = arith.constant dense<0.000000e+00> : vector<8x8xf32>
    %43 = tpu.matmul %42, %28, %cst_19 {dimension_numbers = #tpu.dot_dimension_numbers<[1], [0], [0], [1], [0, 0, 1, 1], [], []>} : vector<8x8xf32>, vector<8x8xf32>, vector<8x8xf32> -> vector<8x8xf32>
    %44 = vector.extract_strided_slice %1 {offsets = [0, 16], sizes = [8, 8], strides = [1, 1]} : vector<8x96xf32> to vector<8x8xf32>
    %45 = vector.extract_strided_slice %3 {offsets = [0, 48], sizes = [8, 8], strides = [1, 1]} : vector<8x96xf32> to vector<8x8xf32>
    %46 = vector.extract_strided_slice %5 {offsets = [0, 80], sizes = [8, 8], strides = [1, 1]} : vector<8x96xf32> to vector<8x8xf32>
    %cst_20 = arith.constant dense<0.000000e+00> : vector<8x8xf32>
    %47 = tpu.matmul %44, %45, %cst_20 {dimension_numbers = #tpu.dot_dimension_numbers<[1], [1], [0], [0], [0, 0, 1, 0], [], []>} : vector<8x8xf32>, vector<8x8xf32>, vector<8x8xf32> -> vector<8x8xf32>
    %cst_21 = arith.constant 0.353553385 : f32
    %48 = vector.broadcast %cst_21 : f32 to vector<8x8xf32>
    %49 = arith.mulf %47, %48 : vector<8x8xf32>
    %50 = arith.addf %49, %7 : vector<8x8xf32>
    %cst_22 = arith.constant dense<0xFF800000> : vector<8xf32>
    %51 = vector.multi_reduction <maximumf>, %50, %cst_22 [1] : vector<8x8xf32> to vector<8xf32>
    %52 = vector.shape_cast %51 : vector<8xf32> to vector<8x1xf32>
    %53 = vector.broadcast %52 : vector<8x1xf32> to vector<8x8xf32>
    %54 = arith.subf %50, %53 : vector<8x8xf32>
    %55 = math.exp %54 : vector<8x8xf32>
    %cst_23 = arith.constant dense<0.000000e+00> : vector<8xf32>
    %56 = vector.multi_reduction <add>, %55, %cst_23 [1] : vector<8x8xf32> to vector<8xf32>
    %57 = vector.shape_cast %56 : vector<8xf32> to vector<8x1xf32>
    %58 = tpu.reciprocal %57 {approx = true} : vector<8x1xf32> -> vector<8x1xf32>
    %59 = vector.broadcast %58 : vector<8x1xf32> to vector<8x8xf32>
    %60 = arith.mulf %55, %59 : vector<8x8xf32>
    %cst_24 = arith.constant dense<0.000000e+00> : vector<8x8xf32>
    %61 = tpu.matmul %60, %46, %cst_24 {dimension_numbers = #tpu.dot_dimension_numbers<[1], [0], [0], [1], [0, 0, 1, 1], [], []>} : vector<8x8xf32>, vector<8x8xf32>, vector<8x8xf32> -> vector<8x8xf32>
    %62 = vector.extract_strided_slice %1 {offsets = [0, 24], sizes = [8, 8], strides = [1, 1]} : vector<8x96xf32> to vector<8x8xf32>
    %63 = vector.extract_strided_slice %3 {offsets = [0, 56], sizes = [8, 8], strides = [1, 1]} : vector<8x96xf32> to vector<8x8xf32>
    %64 = vector.extract_strided_slice %5 {offsets = [0, 88], sizes = [8, 8], strides = [1, 1]} : vector<8x96xf32> to vector<8x8xf32>
    %cst_25 = arith.constant dense<0.000000e+00> : vector<8x8xf32>
    %65 = tpu.matmul %62, %63, %cst_25 {dimension_numbers = #tpu.dot_dimension_numbers<[1], [1], [0], [0], [0, 0, 1, 0], [], []>} : vector<8x8xf32>, vector<8x8xf32>, vector<8x8xf32> -> vector<8x8xf32>
    %cst_26 = arith.constant 0.353553385 : f32
    %66 = vector.broadcast %cst_26 : f32 to vector<8x8xf32>
    %67 = arith.mulf %65, %66 : vector<8x8xf32>
    %68 = arith.addf %67, %7 : vector<8x8xf32>
    %cst_27 = arith.constant dense<0xFF800000> : vector<8xf32>
    %69 = vector.multi_reduction <maximumf>, %68, %cst_27 [1] : vector<8x8xf32> to vector<8xf32>
    %70 = vector.shape_cast %69 : vector<8xf32> to vector<8x1xf32>
    %71 = vector.broadcast %70 : vector<8x1xf32> to vector<8x8xf32>
    %72 = arith.subf %68, %71 : vector<8x8xf32>
    %73 = math.exp %72 : vector<8x8xf32>
    %cst_28 = arith.constant dense<0.000000e+00> : vector<8xf32>
    %74 = vector.multi_reduction <add>, %73, %cst_28 [1] : vector<8x8xf32> to vector<8xf32>
    %75 = vector.shape_cast %74 : vector<8xf32> to vector<8x1xf32>
    %76 = tpu.reciprocal %75 {approx = true} : vector<8x1xf32> -> vector<8x1xf32>
    %77 = vector.broadcast %76 : vector<8x1xf32> to vector<8x8xf32>
    %78 = arith.mulf %73, %77 : vector<8x8xf32>
    %cst_29 = arith.constant dense<0.000000e+00> : vector<8x8xf32>
    %79 = tpu.matmul %78, %64, %cst_29 {dimension_numbers = #tpu.dot_dimension_numbers<[1], [0], [0], [1], [0, 0, 1, 1], [], []>} : vector<8x8xf32>, vector<8x8xf32>, vector<8x8xf32> -> vector<8x8xf32>
    %80 = tpu.concatenate %25, %43, %61, %79 in 1 : vector<8x8xf32>, vector<8x8xf32>, vector<8x8xf32>, vector<8x8xf32> -> vector<8x32xf32>
    %c0_30 = arith.constant 0 : index
    %c0_31 = arith.constant 0 : index
    %c0_32 = arith.constant 0 : index
    %81 = vector.load %arg6[%c0_30, %c0_31, %c0_32] : memref<1x8x32xf32, #tpu.memory_space<vmem>>, vector<1x8x32xf32>
    %82 = vector.shape_cast %81 : vector<1x8x32xf32> to vector<8x32xf32>
    %83 = vector.shape_cast %80 : vector<8x32xf32> to vector<1x8x32xf32>
    tpu.vector_store %arg6[%c0_30, %c0_31, %c0_32], %83 {strides = array<i32>} : memref<1x8x32xf32, #tpu.memory_space<vmem>>, vector<1x8x32xf32>,
    return
  }
  func.func @transform_0(%arg0: i32, %arg1: i32) -> (i32, i32, i32) {
    %c0_i32 = arith.constant 0 : i32
    %c0_i32_0 = arith.constant 0 : i32
    %c0_i32_1 = arith.constant 0 : i32
    return %arg0, %c0_i32, %c0_i32_0 : i32, i32, i32
  }
  func.func @transform_1(%arg0: i32, %arg1: i32) -> (i32, i32, i32) {
    %c0_i32 = arith.constant 0 : i32
    %c0_i32_0 = arith.constant 0 : i32
    %c0_i32_1 = arith.constant 0 : i32
    return %arg0, %c0_i32, %c0_i32_0 : i32, i32, i32
  }
  func.func @transform_2(%arg0: i32, %arg1: i32) -> (i32, i32, i32) {
    %c0_i32 = arith.constant 0 : i32
    %c0_i32_0 = arith.constant 0 : i32
    %c0_i32_1 = arith.constant 0 : i32
    return %arg0, %c0_i32, %c0_i32_0 : i32, i32, i32
  }
  func.func @transform_3(%arg0: i32, %arg1: i32) -> (i32, i32, i32) {
    %c0_i32 = arith.constant 0 : i32
    %c0_i32_0 = arith.constant 0 : i32
    %c0_i32_1 = arith.constant 0 : i32
    return %arg0, %c0_i32, %c0_i32_0 : i32, i32, i32
  }
  func.func @transform_4(%arg0: i32, %arg1: i32) -> (i32, i32, i32) {
    %c0_i32 = arith.constant 0 : i32
    %c0_i32_0 = arith.constant 0 : i32
    return %arg0, %c0_i32, %arg1 : i32, i32, i32
  }
}

module attributes {stable_mosaic.version = 11 : i64} {
  func.func @kernel(%arg0: i32, %arg1: i32, %arg2: memref<1x8x32xf32, #tpu.memory_space<vmem>>, %arg3: memref<1x8x64xf32, #tpu.memory_space<vmem>>, %arg4: memref<1x8x64xf32, #tpu.memory_space<vmem>>, %arg5: memref<1x1x8xf32, #tpu.memory_space<vmem>>, %arg6: memref<1x8x32xf32, #tpu.memory_space<vmem>>) attributes {dimension_semantics = [#tpu.dimension_semantics<parallel>, #tpu.dimension_semantics<parallel>], iteration_bounds = array<i64: 2, 1>, scalar_prefetch = 0 : i64, scratch_operands = 0 : i64, tpu.core_type = #tpu.core_type<tc>, window_params = [{transform_indices = @transform_0, window_bounds = array<i64: 1, 8, 32>}, {transform_indices = @transform_1, window_bounds = array<i64: 1, 8, 64>}, {transform_indices = @transform_2, window_bounds = array<i64: 1, 8, 64>}, {transform_indices = @transform_3, window_bounds = array<i64: 1, 1, 8>}, {transform_indices = @transform_4, window_bounds = array<i64: 1, 8, 32>}]} {
    %c0 = arith.constant 0 : index
    %c0_0 = arith.constant 0 : index
    %c0_1 = arith.constant 0 : index
    %0 = vector.load %arg2[%c0, %c0_0, %c0_1] : memref<1x8x32xf32, #tpu.memory_space<vmem>>, vector<1x8x32xf32>
    %1 = vector.shape_cast %0 : vector<1x8x32xf32> to vector<8x32xf32>
    %c0_2 = arith.constant 0 : index
    %c0_3 = arith.constant 0 : index
    %c0_4 = arith.constant 0 : index
    %2 = vector.load %arg3[%c0_2, %c0_3, %c0_4] : memref<1x8x64xf32, #tpu.memory_space<vmem>>, vector<1x8x64xf32>
    %3 = vector.shape_cast %2 : vector<1x8x64xf32> to vector<8x64xf32>
    %c0_5 = arith.constant 0 : index
    %c0_6 = arith.constant 0 : index
    %c0_7 = arith.constant 0 : index
    %4 = vector.load %arg4[%c0_5, %c0_6, %c0_7] : memref<1x8x64xf32, #tpu.memory_space<vmem>>, vector<1x8x64xf32>
    %5 = vector.shape_cast %4 : vector<1x8x64xf32> to vector<8x64xf32>
    %c0_8 = arith.constant 0 : index
    %c0_9 = arith.constant 0 : index
    %c0_10 = arith.constant 0 : index
    %6 = vector.load %arg5[%c0_8, %c0_9, %c0_10] : memref<1x1x8xf32, #tpu.memory_space<vmem>>, vector<1x1x8xf32>
    %7 = vector.shape_cast %6 : vector<1x1x8xf32> to vector<1x8xf32>
    %8 = vector.extract_strided_slice %1 {offsets = [0, 0], sizes = [8, 8], strides = [1, 1]} : vector<8x32xf32> to vector<8x8xf32>
    %9 = vector.extract_strided_slice %3 {offsets = [0, 0], sizes = [8, 8], strides = [1, 1]} : vector<8x64xf32> to vector<8x8xf32>
    %10 = vector.extract_strided_slice %5 {offsets = [0, 32], sizes = [8, 8], strides = [1, 1]} : vector<8x64xf32> to vector<8x8xf32>
    %cst = arith.constant dense<0.000000e+00> : vector<8x8xf32>
    %11 = tpu.matmul %8, %9, %cst {dimension_numbers = #tpu.dot_dimension_numbers<[1], [1], [0], [0], [0, 0, 1, 0], [], []>} : vector<8x8xf32>, vector<8x8xf32>, vector<8x8xf32> -> vector<8x8xf32>
    %cst_11 = arith.constant 0.353553385 : f32
    %12 = vector.broadcast %cst_11 : f32 to vector<8x8xf32>
    %13 = arith.mulf %11, %12 : vector<8x8xf32>
    %14 = vector.broadcast %7 : vector<1x8xf32> to vector<8x8xf32>
    %15 = arith.addf %13, %14 : vector<8x8xf32>
    %cst_12 = arith.constant dense<0xFF800000> : vector<8xf32>
    %16 = vector.multi_reduction <maximumf>, %15, %cst_12 [1] : vector<8x8xf32> to vector<8xf32>
    %17 = vector.shape_cast %16 : vector<8xf32> to vector<8x1xf32>
    %18 = vector.broadcast %17 : vector<8x1xf32> to vector<8x8xf32>
    %19 = arith.subf %15, %18 : vector<8x8xf32>
    %20 = math.exp %19 : vector<8x8xf32>
    %cst_13 = arith.constant dense<0.000000e+00> : vector<8xf32>
    %21 = vector.multi_reduction <add>, %20, %cst_13 [1] : vector<8x8xf32> to vector<8xf32>
    %22 = vector.shape_cast %21 : vector<8xf32> to vector<8x1xf32>
    %23 = tpu.reciprocal %22 {approx = true} : vector<8x1xf32> -> vector<8x1xf32>
    %24 = vector.broadcast %23 : vector<8x1xf32> to vector<8x8xf32>
    %25 = arith.mulf %20, %24 : vector<8x8xf32>
    %cst_14 = arith.constant dense<0.000000e+00> : vector<8x8xf32>
    %26 = tpu.matmul %25, %10, %cst_14 {dimension_numbers = #tpu.dot_dimension_numbers<[1], [0], [0], [1], [0, 0, 1, 1], [], []>} : vector<8x8xf32>, vector<8x8xf32>, vector<8x8xf32> -> vector<8x8xf32>
    %27 = vector.extract_strided_slice %1 {offsets = [0, 8], sizes = [8, 8], strides = [1, 1]} : vector<8x32xf32> to vector<8x8xf32>
    %28 = vector.extract_strided_slice %3 {offsets = [0, 8], sizes = [8, 8], strides = [1, 1]} : vector<8x64xf32> to vector<8x8xf32>
    %29 = vector.extract_strided_slice %5 {offsets = [0, 40], sizes = [8, 8], strides = [1, 1]} : vector<8x64xf32> to vector<8x8xf32>
    %cst_15 = arith.constant dense<0.000000e+00> : vector<8x8xf32>
    %30 = tpu.matmul %27, %28, %cst_15 {dimension_numbers = #tpu.dot_dimension_numbers<[1], [1], [0], [0], [0, 0, 1, 0], [], []>} : vector<8x8xf32>, vector<8x8xf32>, vector<8x8xf32> -> vector<8x8xf32>
    %cst_16 = arith.constant 0.353553385 : f32
    %31 = vector.broadcast %cst_16 : f32 to vector<8x8xf32>
    %32 = arith.mulf %30, %31 : vector<8x8xf32>
    %33 = vector.broadcast %7 : vector<1x8xf32> to vector<8x8xf32>
    %34 = arith.addf %32, %33 : vector<8x8xf32>
    %cst_17 = arith.constant dense<0xFF800000> : vector<8xf32>
    %35 = vector.multi_reduction <maximumf>, %34, %cst_17 [1] : vector<8x8xf32> to vector<8xf32>
    %36 = vector.shape_cast %35 : vector<8xf32> to vector<8x1xf32>
    %37 = vector.broadcast %36 : vector<8x1xf32> to vector<8x8xf32>
    %38 = arith.subf %34, %37 : vector<8x8xf32>
    %39 = math.exp %38 : vector<8x8xf32>
    %cst_18 = arith.constant dense<0.000000e+00> : vector<8xf32>
    %40 = vector.multi_reduction <add>, %39, %cst_18 [1] : vector<8x8xf32> to vector<8xf32>
    %41 = vector.shape_cast %40 : vector<8xf32> to vector<8x1xf32>
    %42 = tpu.reciprocal %41 {approx = true} : vector<8x1xf32> -> vector<8x1xf32>
    %43 = vector.broadcast %42 : vector<8x1xf32> to vector<8x8xf32>
    %44 = arith.mulf %39, %43 : vector<8x8xf32>
    %cst_19 = arith.constant dense<0.000000e+00> : vector<8x8xf32>
    %45 = tpu.matmul %44, %29, %cst_19 {dimension_numbers = #tpu.dot_dimension_numbers<[1], [0], [0], [1], [0, 0, 1, 1], [], []>} : vector<8x8xf32>, vector<8x8xf32>, vector<8x8xf32> -> vector<8x8xf32>
    %46 = vector.extract_strided_slice %1 {offsets = [0, 16], sizes = [8, 8], strides = [1, 1]} : vector<8x32xf32> to vector<8x8xf32>
    %47 = vector.extract_strided_slice %3 {offsets = [0, 16], sizes = [8, 8], strides = [1, 1]} : vector<8x64xf32> to vector<8x8xf32>
    %48 = vector.extract_strided_slice %5 {offsets = [0, 48], sizes = [8, 8], strides = [1, 1]} : vector<8x64xf32> to vector<8x8xf32>
    %cst_20 = arith.constant dense<0.000000e+00> : vector<8x8xf32>
    %49 = tpu.matmul %46, %47, %cst_20 {dimension_numbers = #tpu.dot_dimension_numbers<[1], [1], [0], [0], [0, 0, 1, 0], [], []>} : vector<8x8xf32>, vector<8x8xf32>, vector<8x8xf32> -> vector<8x8xf32>
    %cst_21 = arith.constant 0.353553385 : f32
    %50 = vector.broadcast %cst_21 : f32 to vector<8x8xf32>
    %51 = arith.mulf %49, %50 : vector<8x8xf32>
    %52 = vector.broadcast %7 : vector<1x8xf32> to vector<8x8xf32>
    %53 = arith.addf %51, %52 : vector<8x8xf32>
    %cst_22 = arith.constant dense<0xFF800000> : vector<8xf32>
    %54 = vector.multi_reduction <maximumf>, %53, %cst_22 [1] : vector<8x8xf32> to vector<8xf32>
    %55 = vector.shape_cast %54 : vector<8xf32> to vector<8x1xf32>
    %56 = vector.broadcast %55 : vector<8x1xf32> to vector<8x8xf32>
    %57 = arith.subf %53, %56 : vector<8x8xf32>
    %58 = math.exp %57 : vector<8x8xf32>
    %cst_23 = arith.constant dense<0.000000e+00> : vector<8xf32>
    %59 = vector.multi_reduction <add>, %58, %cst_23 [1] : vector<8x8xf32> to vector<8xf32>
    %60 = vector.shape_cast %59 : vector<8xf32> to vector<8x1xf32>
    %61 = tpu.reciprocal %60 {approx = true} : vector<8x1xf32> -> vector<8x1xf32>
    %62 = vector.broadcast %61 : vector<8x1xf32> to vector<8x8xf32>
    %63 = arith.mulf %58, %62 : vector<8x8xf32>
    %cst_24 = arith.constant dense<0.000000e+00> : vector<8x8xf32>
    %64 = tpu.matmul %63, %48, %cst_24 {dimension_numbers = #tpu.dot_dimension_numbers<[1], [0], [0], [1], [0, 0, 1, 1], [], []>} : vector<8x8xf32>, vector<8x8xf32>, vector<8x8xf32> -> vector<8x8xf32>
    %65 = vector.extract_strided_slice %1 {offsets = [0, 24], sizes = [8, 8], strides = [1, 1]} : vector<8x32xf32> to vector<8x8xf32>
    %66 = vector.extract_strided_slice %3 {offsets = [0, 24], sizes = [8, 8], strides = [1, 1]} : vector<8x64xf32> to vector<8x8xf32>
    %67 = vector.extract_strided_slice %5 {offsets = [0, 56], sizes = [8, 8], strides = [1, 1]} : vector<8x64xf32> to vector<8x8xf32>
    %cst_25 = arith.constant dense<0.000000e+00> : vector<8x8xf32>
    %68 = tpu.matmul %65, %66, %cst_25 {dimension_numbers = #tpu.dot_dimension_numbers<[1], [1], [0], [0], [0, 0, 1, 0], [], []>} : vector<8x8xf32>, vector<8x8xf32>, vector<8x8xf32> -> vector<8x8xf32>
    %cst_26 = arith.constant 0.353553385 : f32
    %69 = vector.broadcast %cst_26 : f32 to vector<8x8xf32>
    %70 = arith.mulf %68, %69 : vector<8x8xf32>
    %71 = vector.broadcast %7 : vector<1x8xf32> to vector<8x8xf32>
    %72 = arith.addf %70, %71 : vector<8x8xf32>
    %cst_27 = arith.constant dense<0xFF800000> : vector<8xf32>
    %73 = vector.multi_reduction <maximumf>, %72, %cst_27 [1] : vector<8x8xf32> to vector<8xf32>
    %74 = vector.shape_cast %73 : vector<8xf32> to vector<8x1xf32>
    %75 = vector.broadcast %74 : vector<8x1xf32> to vector<8x8xf32>
    %76 = arith.subf %72, %75 : vector<8x8xf32>
    %77 = math.exp %76 : vector<8x8xf32>
    %cst_28 = arith.constant dense<0.000000e+00> : vector<8xf32>
    %78 = vector.multi_reduction <add>, %77, %cst_28 [1] : vector<8x8xf32> to vector<8xf32>
    %79 = vector.shape_cast %78 : vector<8xf32> to vector<8x1xf32>
    %80 = tpu.reciprocal %79 {approx = true} : vector<8x1xf32> -> vector<8x1xf32>
    %81 = vector.broadcast %80 : vector<8x1xf32> to vector<8x8xf32>
    %82 = arith.mulf %77, %81 : vector<8x8xf32>
    %cst_29 = arith.constant dense<0.000000e+00> : vector<8x8xf32>
    %83 = tpu.matmul %82, %67, %cst_29 {dimension_numbers = #tpu.dot_dimension_numbers<[1], [0], [0], [1], [0, 0, 1, 1], [], []>} : vector<8x8xf32>, vector<8x8xf32>, vector<8x8xf32> -> vector<8x8xf32>
    %84 = tpu.concatenate %26, %45, %64, %83 in 1 : vector<8x8xf32>, vector<8x8xf32>, vector<8x8xf32>, vector<8x8xf32> -> vector<8x32xf32>
    %c0_30 = arith.constant 0 : index
    %c0_31 = arith.constant 0 : index
    %c0_32 = arith.constant 0 : index
    %85 = vector.load %arg6[%c0_30, %c0_31, %c0_32] : memref<1x8x32xf32, #tpu.memory_space<vmem>>, vector<1x8x32xf32>
    %86 = vector.shape_cast %85 : vector<1x8x32xf32> to vector<8x32xf32>
    %87 = vector.shape_cast %84 : vector<8x32xf32> to vector<1x8x32xf32>
    tpu.vector_store %arg6[%c0_30, %c0_31, %c0_32], %87 {strides = array<i32>} : memref<1x8x32xf32, #tpu.memory_space<vmem>>, vector<1x8x32xf32>,
    return
  }
  func.func @transform_0(%arg0: i32, %arg1: i32) -> (i32, i32, i32) {
    %c0_i32 = arith.constant 0 : i32
    %c0_i32_0 = arith.constant 0 : i32
    %c0_i32_1 = arith.constant 0 : i32
    return %arg0, %c0_i32, %c0_i32_0 : i32, i32, i32
  }
  func.func @transform_1(%arg0: i32, %arg1: i32) -> (i32, i32, i32) {
    %c0_i32 = arith.constant 0 : i32
    %c0_i32_0 = arith.constant 0 : i32
    %c0_i32_1 = arith.constant 0 : i32
    return %arg0, %c0_i32, %c0_i32_0 : i32, i32, i32
  }
  func.func @transform_2(%arg0: i32, %arg1: i32) -> (i32, i32, i32) {
    %c0_i32 = arith.constant 0 : i32
    %c0_i32_0 = arith.constant 0 : i32
    %c0_i32_1 = arith.constant 0 : i32
    return %arg0, %c0_i32, %c0_i32_0 : i32, i32, i32
  }
  func.func @transform_3(%arg0: i32, %arg1: i32) -> (i32, i32, i32) {
    %c0_i32 = arith.constant 0 : i32
    %c0_i32_0 = arith.constant 0 : i32
    %c0_i32_1 = arith.constant 0 : i32
    return %arg0, %c0_i32, %c0_i32_0 : i32, i32, i32
  }
  func.func @transform_4(%arg0: i32, %arg1: i32) -> (i32, i32, i32) {
    %c0_i32 = arith.constant 0 : i32
    %c0_i32_0 = arith.constant 0 : i32
    return %arg0, %c0_i32, %arg1 : i32, i32, i32
  }
}

module attributes {stable_mosaic.version = 11 : i64} {
  func.func @kernel(%arg0: i32, %arg1: i32, %arg2: i32, %arg3: memref<16x32xf32, #tpu.memory_space<vmem>>, %arg4: memref<32x32xf32, #tpu.memory_space<vmem>>, %arg5: memref<1x32xf32, #tpu.memory_space<vmem>>, %arg6: memref<16x32xf32, #tpu.memory_space<vmem>>, %arg7: memref<16x32xf32, #tpu.memory_space<vmem>>) attributes {dimension_semantics = [#tpu.dimension_semantics<parallel>, #tpu.dimension_semantics<parallel>, #tpu.dimension_semantics<arbitrary>], iteration_bounds = array<i64: 1, 1, 1>, scalar_prefetch = 0 : i64, scratch_operands = 1 : i64, tpu.core_type = #tpu.core_type<tc>, window_params = [{transform_indices = @transform_0, window_bounds = array<i64: 16, 32>}, {transform_indices = @transform_1, window_bounds = array<i64: 32, 32>}, {transform_indices = @transform_2, window_bounds = array<i64: 1, 32>}, {transform_indices = @transform_3, window_bounds = array<i64: 16, 32>}]} {
    %c0_i32 = arith.constant 0 : i32
    %0 = arith.cmpi eq, %arg2, %c0_i32 : i32
    %1 = arith.extui %0 : i1 to i32
    %c0_i32_0 = arith.constant 0 : i32
    %2 = arith.cmpi ne, %1, %c0_i32_0 : i32
    scf.if %2 {
      %cst_10 = arith.constant 0.000000e+00 : f32
      %12 = vector.broadcast %cst_10 : f32 to vector<16x32xf32>
      %c0_11 = arith.constant 0 : index
      %c0_12 = arith.constant 0 : index
      %13 = vector.load %arg7[%c0_11, %c0_12] : memref<16x32xf32, #tpu.memory_space<vmem>>, vector<16x32xf32>
      tpu.vector_store %arg7[%c0_11, %c0_12], %12 {strides = array<i32>} : memref<16x32xf32, #tpu.memory_space<vmem>>, vector<16x32xf32>,
    } else {
    }
    %c0 = arith.constant 0 : index
    %c0_1 = arith.constant 0 : index
    %3 = vector.load %arg7[%c0, %c0_1] : memref<16x32xf32, #tpu.memory_space<vmem>>, vector<16x32xf32>
    %c0_2 = arith.constant 0 : index
    %c0_3 = arith.constant 0 : index
    %4 = vector.load %arg3[%c0_2, %c0_3] : memref<16x32xf32, #tpu.memory_space<vmem>>, vector<16x32xf32>
    %c0_4 = arith.constant 0 : index
    %c0_5 = arith.constant 0 : index
    %5 = vector.load %arg4[%c0_4, %c0_5] : memref<32x32xf32, #tpu.memory_space<vmem>>, vector<32x32xf32>
    %cst = arith.constant dense<0.000000e+00> : vector<16x32xf32>
    %6 = tpu.matmul %4, %5, %cst {dimension_numbers = #tpu.dot_dimension_numbers<[1], [0], [0], [1], [0, 0, 1, 1], [], []>} : vector<16x32xf32>, vector<32x32xf32>, vector<16x32xf32> -> vector<16x32xf32>
    %7 = arith.addf %3, %6 : vector<16x32xf32>
    %c0_6 = arith.constant 0 : index
    %c0_7 = arith.constant 0 : index
    %8 = vector.load %arg7[%c0_6, %c0_7] : memref<16x32xf32, #tpu.memory_space<vmem>>, vector<16x32xf32>
    tpu.vector_store %arg7[%c0_6, %c0_7], %7 {strides = array<i32>} : memref<16x32xf32, #tpu.memory_space<vmem>>, vector<16x32xf32>,
    %c0_i32_8 = arith.constant 0 : i32
    %9 = arith.cmpi eq, %arg2, %c0_i32_8 : i32
    %10 = arith.extui %9 : i1 to i32
    %c0_i32_9 = arith.constant 0 : i32
    %11 = arith.cmpi ne, %10, %c0_i32_9 : i32
    scf.if %11 {
      %c0_10 = arith.constant 0 : index
      %c0_11 = arith.constant 0 : index
      %12 = vector.load %arg7[%c0_10, %c0_11] : memref<16x32xf32, #tpu.memory_space<vmem>>, vector<16x32xf32>
      %c0_12 = arith.constant 0 : index
      %c0_13 = arith.constant 0 : index
      %13 = vector.load %arg5[%c0_12, %c0_13] : memref<1x32xf32, #tpu.memory_space<vmem>>, vector<1x32xf32>
      %14 = vector.broadcast %13 : vector<1x32xf32> to vector<16x32xf32>
      %15 = arith.addf %12, %14 : vector<16x32xf32>
      %c0_14 = arith.constant 0 : index
      %c0_15 = arith.constant 0 : index
      %16 = vector.load %arg6[%c0_14, %c0_15] : memref<16x32xf32, #tpu.memory_space<vmem>>, vector<16x32xf32>
      tpu.vector_store %arg6[%c0_14, %c0_15], %15 {strides = array<i32>} : memref<16x32xf32, #tpu.memory_space<vmem>>, vector<16x32xf32>,
    } else {
    }
    return
  }
  func.func @transform_0(%arg0: i32, %arg1: i32, %arg2: i32) -> (i32, i32) {
    %c0_i32 = arith.constant 0 : i32
    return %arg0, %arg2 : i32, i32
  }
  func.func @transform_1(%arg0: i32, %arg1: i32, %arg2: i32) -> (i32, i32) {
    %c0_i32 = arith.constant 0 : i32
    return %arg2, %arg1 : i32, i32
  }
  func.func @transform_2(%arg0: i32, %arg1: i32, %arg2: i32) -> (i32, i32) {
    %c0_i32 = arith.constant 0 : i32
    %c0_i32_0 = arith.constant 0 : i32
    return %c0_i32, %arg1 : i32, i32
  }
  func.func @transform_3(%arg0: i32, %arg1: i32, %arg2: i32) -> (i32, i32) {
    %c0_i32 = arith.constant 0 : i32
    return %arg0, %arg1 : i32, i32
  }
}

module attributes {stable_mosaic.version = 11 : i64} {
  func.func @kernel(%arg0: i32, %arg1: i32, %arg2: i32, %arg3: memref<16x32xf32, #tpu.memory_space<vmem>>, %arg4: memref<32x32xf32, #tpu.memory_space<vmem>>, %arg5: memref<1x32xf32, #tpu.memory_space<vmem>>, %arg6: memref<16x32xf32, #tpu.memory_space<vmem>>, %arg7: memref<16x32xf32, #tpu.memory_space<vmem>>, %arg8: memref<16x32xf32, #tpu.memory_space<vmem>>) attributes {dimension_semantics = [#tpu.dimension_semantics<parallel>, #tpu.dimension_semantics<parallel>, #tpu.dimension_semantics<arbitrary>], iteration_bounds = array<i64: 1, 1, 1>, scalar_prefetch = 0 : i64, scratch_operands = 1 : i64, tpu.core_type = #tpu.core_type<tc>, window_params = [{transform_indices = @transform_0, window_bounds = array<i64: 16, 32>}, {transform_indices = @transform_1, window_bounds = array<i64: 32, 32>}, {transform_indices = @transform_2, window_bounds = array<i64: 1, 32>}, {transform_indices = @transform_3, window_bounds = array<i64: 16, 32>}, {transform_indices = @transform_4, window_bounds = array<i64: 16, 32>}]} {
    %c0_i32 = arith.constant 0 : i32
    %0 = arith.cmpi eq, %arg2, %c0_i32 : i32
    %1 = arith.extui %0 : i1 to i32
    %c0_i32_0 = arith.constant 0 : i32
    %2 = arith.cmpi ne, %1, %c0_i32_0 : i32
    scf.if %2 {
      %cst_10 = arith.constant 0.000000e+00 : f32
      %12 = vector.broadcast %cst_10 : f32 to vector<16x32xf32>
      %c0_11 = arith.constant 0 : index
      %c0_12 = arith.constant 0 : index
      %13 = vector.load %arg8[%c0_11, %c0_12] : memref<16x32xf32, #tpu.memory_space<vmem>>, vector<16x32xf32>
      tpu.vector_store %arg8[%c0_11, %c0_12], %12 {strides = array<i32>} : memref<16x32xf32, #tpu.memory_space<vmem>>, vector<16x32xf32>,
    } else {
    }
    %c0 = arith.constant 0 : index
    %c0_1 = arith.constant 0 : index
    %3 = vector.load %arg8[%c0, %c0_1] : memref<16x32xf32, #tpu.memory_space<vmem>>, vector<16x32xf32>
    %c0_2 = arith.constant 0 : index
    %c0_3 = arith.constant 0 : index
    %4 = vector.load %arg3[%c0_2, %c0_3] : memref<16x32xf32, #tpu.memory_space<vmem>>, vector<16x32xf32>
    %c0_4 = arith.constant 0 : index
    %c0_5 = arith.constant 0 : index
    %5 = vector.load %arg4[%c0_4, %c0_5] : memref<32x32xf32, #tpu.memory_space<vmem>>, vector<32x32xf32>
    %cst = arith.constant dense<0.000000e+00> : vector<16x32xf32>
    %6 = tpu.matmul %4, %5, %cst {dimension_numbers = #tpu.dot_dimension_numbers<[1], [0], [0], [1], [0, 0, 1, 1], [], []>} : vector<16x32xf32>, vector<32x32xf32>, vector<16x32xf32> -> vector<16x32xf32>
    %7 = arith.addf %3, %6 : vector<16x32xf32>
    %c0_6 = arith.constant 0 : index
    %c0_7 = arith.constant 0 : index
    %8 = vector.load %arg8[%c0_6, %c0_7] : memref<16x32xf32, #tpu.memory_space<vmem>>, vector<16x32xf32>
    tpu.vector_store %arg8[%c0_6, %c0_7], %7 {strides = array<i32>} : memref<16x32xf32, #tpu.memory_space<vmem>>, vector<16x32xf32>,
    %c0_i32_8 = arith.constant 0 : i32
    %9 = arith.cmpi eq, %arg2, %c0_i32_8 : i32
    %10 = arith.extui %9 : i1 to i32
    %c0_i32_9 = arith.constant 0 : i32
    %11 = arith.cmpi ne, %10, %c0_i32_9 : i32
    scf.if %11 {
      %c0_10 = arith.constant 0 : index
      %c0_11 = arith.constant 0 : index
      %12 = vector.load %arg8[%c0_10, %c0_11] : memref<16x32xf32, #tpu.memory_space<vmem>>, vector<16x32xf32>
      %c0_12 = arith.constant 0 : index
      %c0_13 = arith.constant 0 : index
      %13 = vector.load %arg5[%c0_12, %c0_13] : memref<1x32xf32, #tpu.memory_space<vmem>>, vector<1x32xf32>
      %14 = vector.broadcast %13 : vector<1x32xf32> to vector<16x32xf32>
      %15 = arith.addf %12, %14 : vector<16x32xf32>
      %c0_14 = arith.constant 0 : index
      %c0_15 = arith.constant 0 : index
      %16 = vector.load %arg6[%c0_14, %c0_15] : memref<16x32xf32, #tpu.memory_space<vmem>>, vector<16x32xf32>
      %17 = arith.addf %15, %16 : vector<16x32xf32>
      %c0_16 = arith.constant 0 : index
      %c0_17 = arith.constant 0 : index
      %18 = vector.load %arg7[%c0_16, %c0_17] : memref<16x32xf32, #tpu.memory_space<vmem>>, vector<16x32xf32>
      tpu.vector_store %arg7[%c0_16, %c0_17], %17 {strides = array<i32>} : memref<16x32xf32, #tpu.memory_space<vmem>>, vector<16x32xf32>,
    } else {
    }
    return
  }
  func.func @transform_0(%arg0: i32, %arg1: i32, %arg2: i32) -> (i32, i32) {
    %c0_i32 = arith.constant 0 : i32
    return %arg0, %arg2 : i32, i32
  }
  func.func @transform_1(%arg0: i32, %arg1: i32, %arg2: i32) -> (i32, i32) {
    %c0_i32 = arith.constant 0 : i32
    return %arg2, %arg1 : i32, i32
  }
  func.func @transform_2(%arg0: i32, %arg1: i32, %arg2: i32) -> (i32, i32) {
    %c0_i32 = arith.constant 0 : i32
    %c0_i32_0 = arith.constant 0 : i32
    return %c0_i32, %arg1 : i32, i32
  }
  func.func @transform_3(%arg0: i32, %arg1: i32, %arg2: i32) -> (i32, i32) {
    %c0_i32 = arith.constant 0 : i32
    return %arg0, %arg1 : i32, i32
  }
  func.func @transform_4(%arg0: i32, %arg1: i32, %arg2: i32) -> (i32, i32) {
    %c0_i32 = arith.constant 0 : i32
    return %arg0, %arg1 : i32, i32
  }
}

module attributes {stable_mosaic.version = 11 : i64} {
  func.func @kernel(%arg0: i32, %arg1: i32, %arg2: i32, %arg3: memref<16x32xf32, #tpu.memory_space<vmem>>, %arg4: memref<32x128xf32, #tpu.memory_space<vmem>>, %arg5: memref<1x128xf32, #tpu.memory_space<vmem>>, %arg6: memref<16x128xf32, #tpu.memory_space<vmem>>, %arg7: memref<16x128xf32, #tpu.memory_space<vmem>>) attributes {dimension_semantics = [#tpu.dimension_semantics<parallel>, #tpu.dimension_semantics<parallel>, #tpu.dimension_semantics<arbitrary>], iteration_bounds = array<i64: 1, 1, 1>, scalar_prefetch = 0 : i64, scratch_operands = 1 : i64, tpu.core_type = #tpu.core_type<tc>, window_params = [{transform_indices = @transform_0, window_bounds = array<i64: 16, 32>}, {transform_indices = @transform_1, window_bounds = array<i64: 32, 128>}, {transform_indices = @transform_2, window_bounds = array<i64: 1, 128>}, {transform_indices = @transform_3, window_bounds = array<i64: 16, 128>}]} {
    %c0_i32 = arith.constant 0 : i32
    %0 = arith.cmpi eq, %arg2, %c0_i32 : i32
    %1 = arith.extui %0 : i1 to i32
    %c0_i32_0 = arith.constant 0 : i32
    %2 = arith.cmpi ne, %1, %c0_i32_0 : i32
    scf.if %2 {
      %cst_10 = arith.constant 0.000000e+00 : f32
      %12 = vector.broadcast %cst_10 : f32 to vector<16x128xf32>
      %c0_11 = arith.constant 0 : index
      %c0_12 = arith.constant 0 : index
      %13 = vector.load %arg7[%c0_11, %c0_12] : memref<16x128xf32, #tpu.memory_space<vmem>>, vector<16x128xf32>
      tpu.vector_store %arg7[%c0_11, %c0_12], %12 {strides = array<i32>} : memref<16x128xf32, #tpu.memory_space<vmem>>, vector<16x128xf32>,
    } else {
    }
    %c0 = arith.constant 0 : index
    %c0_1 = arith.constant 0 : index
    %3 = vector.load %arg7[%c0, %c0_1] : memref<16x128xf32, #tpu.memory_space<vmem>>, vector<16x128xf32>
    %c0_2 = arith.constant 0 : index
    %c0_3 = arith.constant 0 : index
    %4 = vector.load %arg3[%c0_2, %c0_3] : memref<16x32xf32, #tpu.memory_space<vmem>>, vector<16x32xf32>
    %c0_4 = arith.constant 0 : index
    %c0_5 = arith.constant 0 : index
    %5 = vector.load %arg4[%c0_4, %c0_5] : memref<32x128xf32, #tpu.memory_space<vmem>>, vector<32x128xf32>
    %cst = arith.constant dense<0.000000e+00> : vector<16x128xf32>
    %6 = tpu.matmul %4, %5, %cst {dimension_numbers = #tpu.dot_dimension_numbers<[1], [0], [0], [1], [0, 0, 1, 1], [], []>} : vector<16x32xf32>, vector<32x128xf32>, vector<16x128xf32> -> vector<16x128xf32>
    %7 = arith.addf %3, %6 : vector<16x128xf32>
    %c0_6 = arith.constant 0 : index
    %c0_7 = arith.constant 0 : index
    %8 = vector.load %arg7[%c0_6, %c0_7] : memref<16x128xf32, #tpu.memory_space<vmem>>, vector<16x128xf32>
    tpu.vector_store %arg7[%c0_6, %c0_7], %7 {strides = array<i32>} : memref<16x128xf32, #tpu.memory_space<vmem>>, vector<16x128xf32>,
    %c0_i32_8 = arith.constant 0 : i32
    %9 = arith.cmpi eq, %arg2, %c0_i32_8 : i32
    %10 = arith.extui %9 : i1 to i32
    %c0_i32_9 = arith.constant 0 : i32
    %11 = arith.cmpi ne, %10, %c0_i32_9 : i32
    scf.if %11 {
      %c0_10 = arith.constant 0 : index
      %c0_11 = arith.constant 0 : index
      %12 = vector.load %arg7[%c0_10, %c0_11] : memref<16x128xf32, #tpu.memory_space<vmem>>, vector<16x128xf32>
      %c0_12 = arith.constant 0 : index
      %c0_13 = arith.constant 0 : index
      %13 = vector.load %arg5[%c0_12, %c0_13] : memref<1x128xf32, #tpu.memory_space<vmem>>, vector<1x128xf32>
      %14 = vector.broadcast %13 : vector<1x128xf32> to vector<16x128xf32>
      %15 = arith.addf %12, %14 : vector<16x128xf32>
      %cst_14 = arith.constant 0.000000e+00 : f32
      %16 = vector.broadcast %cst_14 : f32 to vector<16x128xf32>
      %17 = arith.maximumf %15, %16 : vector<16x128xf32>
      %c0_15 = arith.constant 0 : index
      %c0_16 = arith.constant 0 : index
      %18 = vector.load %arg6[%c0_15, %c0_16] : memref<16x128xf32, #tpu.memory_space<vmem>>, vector<16x128xf32>
      tpu.vector_store %arg6[%c0_15, %c0_16], %17 {strides = array<i32>} : memref<16x128xf32, #tpu.memory_space<vmem>>, vector<16x128xf32>,
    } else {
    }
    return
  }
  func.func @transform_0(%arg0: i32, %arg1: i32, %arg2: i32) -> (i32, i32) {
    %c0_i32 = arith.constant 0 : i32
    return %arg0, %arg2 : i32, i32
  }
  func.func @transform_1(%arg0: i32, %arg1: i32, %arg2: i32) -> (i32, i32) {
    %c0_i32 = arith.constant 0 : i32
    return %arg2, %arg1 : i32, i32
  }
  func.func @transform_2(%arg0: i32, %arg1: i32, %arg2: i32) -> (i32, i32) {
    %c0_i32 = arith.constant 0 : i32
    %c0_i32_0 = arith.constant 0 : i32
    return %c0_i32, %arg1 : i32, i32
  }
  func.func @transform_3(%arg0: i32, %arg1: i32, %arg2: i32) -> (i32, i32) {
    %c0_i32 = arith.constant 0 : i32
    return %arg0, %arg1 : i32, i32
  }
}

module attributes {stable_mosaic.version = 11 : i64} {
  func.func @kernel(%arg0: i32, %arg1: i32, %arg2: i32, %arg3: memref<16x128xf32, #tpu.memory_space<vmem>>, %arg4: memref<128x32xf32, #tpu.memory_space<vmem>>, %arg5: memref<1x32xf32, #tpu.memory_space<vmem>>, %arg6: memref<16x32xf32, #tpu.memory_space<vmem>>, %arg7: memref<16x32xf32, #tpu.memory_space<vmem>>, %arg8: memref<16x32xf32, #tpu.memory_space<vmem>>) attributes {dimension_semantics = [#tpu.dimension_semantics<parallel>, #tpu.dimension_semantics<parallel>, #tpu.dimension_semantics<arbitrary>], iteration_bounds = array<i64: 1, 1, 1>, scalar_prefetch = 0 : i64, scratch_operands = 1 : i64, tpu.core_type = #tpu.core_type<tc>, window_params = [{transform_indices = @transform_0, window_bounds = array<i64: 16, 128>}, {transform_indices = @transform_1, window_bounds = array<i64: 128, 32>}, {transform_indices = @transform_2, window_bounds = array<i64: 1, 32>}, {transform_indices = @transform_3, window_bounds = array<i64: 16, 32>}, {transform_indices = @transform_4, window_bounds = array<i64: 16, 32>}]} {
    %c0_i32 = arith.constant 0 : i32
    %0 = arith.cmpi eq, %arg2, %c0_i32 : i32
    %1 = arith.extui %0 : i1 to i32
    %c0_i32_0 = arith.constant 0 : i32
    %2 = arith.cmpi ne, %1, %c0_i32_0 : i32
    scf.if %2 {
      %cst_10 = arith.constant 0.000000e+00 : f32
      %12 = vector.broadcast %cst_10 : f32 to vector<16x32xf32>
      %c0_11 = arith.constant 0 : index
      %c0_12 = arith.constant 0 : index
      %13 = vector.load %arg8[%c0_11, %c0_12] : memref<16x32xf32, #tpu.memory_space<vmem>>, vector<16x32xf32>
      tpu.vector_store %arg8[%c0_11, %c0_12], %12 {strides = array<i32>} : memref<16x32xf32, #tpu.memory_space<vmem>>, vector<16x32xf32>,
    } else {
    }
    %c0 = arith.constant 0 : index
    %c0_1 = arith.constant 0 : index
    %3 = vector.load %arg8[%c0, %c0_1] : memref<16x32xf32, #tpu.memory_space<vmem>>, vector<16x32xf32>
    %c0_2 = arith.constant 0 : index
    %c0_3 = arith.constant 0 : index
    %4 = vector.load %arg3[%c0_2, %c0_3] : memref<16x128xf32, #tpu.memory_space<vmem>>, vector<16x128xf32>
    %c0_4 = arith.constant 0 : index
    %c0_5 = arith.constant 0 : index
    %5 = vector.load %arg4[%c0_4, %c0_5] : memref<128x32xf32, #tpu.memory_space<vmem>>, vector<128x32xf32>
    %cst = arith.constant dense<0.000000e+00> : vector<16x32xf32>
    %6 = tpu.matmul %4, %5, %cst {dimension_numbers = #tpu.dot_dimension_numbers<[1], [0], [0], [1], [0, 0, 1, 1], [], []>} : vector<16x128xf32>, vector<128x32xf32>, vector<16x32xf32> -> vector<16x32xf32>
    %7 = arith.addf %3, %6 : vector<16x32xf32>
    %c0_6 = arith.constant 0 : index
    %c0_7 = arith.constant 0 : index
    %8 = vector.load %arg8[%c0_6, %c0_7] : memref<16x32xf32, #tpu.memory_space<vmem>>, vector<16x32xf32>
    tpu.vector_store %arg8[%c0_6, %c0_7], %7 {strides = array<i32>} : memref<16x32xf32, #tpu.memory_space<vmem>>, vector<16x32xf32>,
    %c0_i32_8 = arith.constant 0 : i32
    %9 = arith.cmpi eq, %arg2, %c0_i32_8 : i32
    %10 = arith.extui %9 : i1 to i32
    %c0_i32_9 = arith.constant 0 : i32
    %11 = arith.cmpi ne, %10, %c0_i32_9 : i32
    scf.if %11 {
      %c0_10 = arith.constant 0 : index
      %c0_11 = arith.constant 0 : index
      %12 = vector.load %arg8[%c0_10, %c0_11] : memref<16x32xf32, #tpu.memory_space<vmem>>, vector<16x32xf32>
      %c0_12 = arith.constant 0 : index
      %c0_13 = arith.constant 0 : index
      %13 = vector.load %arg5[%c0_12, %c0_13] : memref<1x32xf32, #tpu.memory_space<vmem>>, vector<1x32xf32>
      %14 = vector.broadcast %13 : vector<1x32xf32> to vector<16x32xf32>
      %15 = arith.addf %12, %14 : vector<16x32xf32>
      %c0_14 = arith.constant 0 : index
      %c0_15 = arith.constant 0 : index
      %16 = vector.load %arg6[%c0_14, %c0_15] : memref<16x32xf32, #tpu.memory_space<vmem>>, vector<16x32xf32>
      %17 = arith.addf %15, %16 : vector<16x32xf32>
      %c0_16 = arith.constant 0 : index
      %c0_17 = arith.constant 0 : index
      %18 = vector.load %arg7[%c0_16, %c0_17] : memref<16x32xf32, #tpu.memory_space<vmem>>, vector<16x32xf32>
      tpu.vector_store %arg7[%c0_16, %c0_17], %17 {strides = array<i32>} : memref<16x32xf32, #tpu.memory_space<vmem>>, vector<16x32xf32>,
    } else {
    }
    return
  }
  func.func @transform_0(%arg0: i32, %arg1: i32, %arg2: i32) -> (i32, i32) {
    %c0_i32 = arith.constant 0 : i32
    return %arg0, %arg2 : i32, i32
  }
  func.func @transform_1(%arg0: i32, %arg1: i32, %arg2: i32) -> (i32, i32) {
    %c0_i32 = arith.constant 0 : i32
    return %arg2, %arg1 : i32, i32
  }
  func.func @transform_2(%arg0: i32, %arg1: i32, %arg2: i32) -> (i32, i32) {
    %c0_i32 = arith.constant 0 : i32
    %c0_i32_0 = arith.constant 0 : i32
    return %c0_i32, %arg1 : i32, i32
  }
  func.func @transform_3(%arg0: i32, %arg1: i32, %arg2: i32) -> (i32, i32) {
    %c0_i32 = arith.constant 0 : i32
    return %arg0, %arg1 : i32, i32
  }
  func.func @transform_4(%arg0: i32, %arg1: i32, %arg2: i32) -> (i32, i32) {
    %c0_i32 = arith.constant 0 : i32
    return %arg0, %arg1 : i32, i32
  }
}

</mosaic_0001>

<bundles_post_ra>
// kernel: _lambda_.18
= control target key start
LH: loop header
LB: loop body
LE: loop exit
PB: predicated region body
PF: predicated region fallthrough
CT: control target
= control target key end

     0   :  { %vm29_vm0 = vcmask 261120   ;;  %vm18_vm1 = vcmask 523264   ;;  %v165_v3 = vmov 0.0   ;;  %s221_s1 = inlined_call_operand.vmem [shape: f32[32,64], index: 1, kind: input, shape index: {}]   ;;  %s222_s0 = inlined_call_operand.vmem [shape: f32[16,32], index: 0, kind: input, shape index: {}]   ;;  %s223_s2 = inlined_call_operand.vmem [shape: f32[1,64], index: 2, kind: input, shape index: {}]   ;;  %s224_s3 = inlined_call_operand.vmem [shape: f32[16,64], index: 3, kind: output, shape index: {}]  }
   0x1   :  { %v25_v0 = vld [vmem:[%s221_s1] sm:$0xff]  ;;  %v26_v1 = vld [vmem:[%s221_s1 + $0x8] sm:$0xff]  ;;  %v27_v2 = vld [vmem:[%s221_s1 + $0x10] sm:$0xff]  ;;  %20 = vst.msk [vmem:[#allocation2 + $0x8] sm:$0xff] %vm18_vm1, %v165_v3 }
   0x2   :  { %19 = vst.msk [vmem:[#allocation2] sm:$0xff] %vm18_vm1, %v165_v3  ;;  %v156_v4 = vpack.c.bf16 %v26_v1, %v25_v0  ;;  %v28_v5 = vld [vmem:[%s221_s1 + $0x18] sm:$0xff]  ;;  %v23_v6 = vld [vmem:[%s222_s0] sm:$0xff]  ;;  %v24_v8 = vld [vmem:[%s222_s0 + $0x8] sm:$0xff] }
   0x3   :  { %v160_v7 = vpack.c.bf16 %v28_v5, %v27_v2  ;;  %153 = vmatprep.mubr.msk.f32.mxu0 %vm29_vm0, %v23_v6  ;;  %v138_v15 = vld [vmem:[%s223_s2] ss:$0 sm:$0xff] }
   0x4   :  { %157 = vmatprep.subr.bf16.mxu0 %v156_v4 }
   0x5   :  { %159 = vmatpush3.bf16.msra.mxu0 %v156_v4 }
   0x6   :  { %161 = vmatprep.subr.bf16.mxu0 %v160_v7 }
   0x8   :  { %v22_v9 = vld [vmem:[#allocation2 + $0x8] sm:$0xff] }
   0x9   :  { %163 = vmatpush3.bf16.msra.mxu0 %v160_v7  ;;  %v21_v10 = vld [vmem:[#allocation2] sm:$0xff] }
   0xc   :  { %154 = vmatmul.mubr.msk.f32.vlgmr.msra.gmra.mrb[0].mxu0 %vm29_vm0, %v24_v8 }
  0xdf   :  { %v155_v11 = vpop.f32.mrb[0].mxu0 }
  0xe0   :  { %v112_v12 = vadd.f32 %v155_v11, %v22_v9  ;;  %v102_v13 = vpop.f32.mrb[1].mxu0 }
  0xe1   :  { %v111_v14 = vadd.f32 %v102_v13, %v21_v10 }
  0xe2   :  { %115 = vst.msk [vmem:[#allocation2 + $0x8] sm:$0xff] %vm18_vm1, %v112_v12 }
  0xe3   :  { %114 = vst.msk [vmem:[#allocation2] sm:$0xff] %vm18_vm1, %v111_v14 }
  0xe9   :  { %v120_v16 = vld [vmem:[#allocation2 + $0x8] sm:$0xff] }
  0xea   :  { %v129_v17 = vadd.f32 %v138_v15, %v120_v16  ;;  %v119_v18 = vld [vmem:[#allocation2] sm:$0xff] }
  0xeb   :  { %v128_v19 = vadd.f32 %v138_v15, %v119_v18 }
  0xec   :  { %131 = vst.msk [vmem:[%s224_s3 + $0x8] sm:$0xff] %vm18_vm1, %v129_v17 }
  0xed   :  { %130 = vst.msk [vmem:[%s224_s3] sm:$0xff] %vm18_vm1, %v128_v19 }

// kernel: _lambda_.12
= control target key start
LH: loop header
LB: loop body
LE: loop exit
PB: predicated region body
PF: predicated region fallthrough
CT: control target
= control target key end

     0   :  { %vm16_vm0 = vcmask 261120   ;;  %s118_s0 = inlined_call_operand.vmem [shape: f32[16,32], index: 0, kind: input, shape index: {}]   ;;  %s119_s1 = inlined_call_operand.vmem [shape: f32[1,32], index: 1, kind: input, shape index: {}]   ;;  %s120_s2 = inlined_call_operand.vmem [shape: f32[1,32], index: 2, kind: input, shape index: {}]   ;;  %s121_s3 = inlined_call_operand.vmem [shape: f32[16,32], index: 3, kind: output, shape index: {}]  }
   0x1   :  { %v14_v0 = vld [vmem:[%s118_s0] sm:$0xff]  ;;  %v15_v1 = vld [vmem:[%s118_s0 + $0x8] sm:$0xff] }
   0x2   :  { %v17_v2 = vsel %vm16_vm0, %v14_v0, 0.0  ;;  %v20_v3 = vsel %vm16_vm0, %v15_v1, 0.0  ;;  %v68_v21 = vld [vmem:[%s119_s1] ss:$0 sm:$0xff] }
   0x3   :  { %18 = vadd.xlane.f32.xlu0 %v17_v2  ;;  %v69_v23 = vld [vmem:[%s120_s2] ss:$0 sm:$0xff] }
   0x7   :  { %21 = vadd.xlane.f32.xlu0 %v20_v3 }
  0x90   :  { %v19_v4 = vpop.xlane.xlu0 %18 }
  0x91   :  { %v24_v5 = vmul.f32 0.03125, %v19_v4 }
  0x93   :  { %v26_v6 = vsub.f32 %v14_v0, %v24_v5 }
  0x94   :  { %v22_v7 = vpop.xlane.xlu0 %21 }
  0x95   :  { %v25_v8 = vmul.f32 0.03125, %v22_v7  ;;  %v28_v9 = vmul.f32 %v26_v6, %v26_v6 }
  0x97   :  { %v27_v10 = vsub.f32 %v15_v1, %v25_v8  ;;  %v30_v11 = vsel %vm16_vm0, %v28_v9, 0.0 }
  0x98   :  { %31 = vadd.xlane.f32.xlu1 %v30_v11 }
  0x99   :  { %v29_v12 = vmul.f32 %v27_v10, %v27_v10 }
  0x9b   :  { %v33_v13 = vsel %vm16_vm0, %v29_v12, 0.0 }
  0x9c   :  { %34 = vadd.xlane.f32.xlu1 %v33_v13 }
 0x125   :  { %v32_v14 = vpop.xlane.xlu1 %31 }
 0x126   :  { %v36_v15 = vmul.f32 0.032258064, %v32_v14 }
 0x128   :  { %v38_v16 = vadd.f32 1e-06, %v36_v15 }
 0x129   :  { %v35_v17 = vpop.xlane.xlu1 %34 }
 0x12a   :  { %70 = vrsqrt.f32 %v38_v16  ;;  %v37_v18 = vmul.f32 0.032258064, %v35_v17 }
 0x12c   :  { %v39_v19 = vadd.f32 1e-06, %v37_v18 }
 0x12e   :  { %72 = vrsqrt.f32 %v39_v19 }
 0x134   :  { %v71_v20 = vpop.eup %70 }
 0x135   :  { %v43_v22 = vmul.f32 %v71_v20, %v26_v6 }
 0x137   :  { %v51_v24 = vmul.f32 %v68_v21, %v43_v22 }
 0x138   :  { %v73_v25 = vpop.eup %72 }
 0x139   :  { %v60_v26 = vadd.f32 %v69_v23, %v51_v24  ;;  %v44_v27 = vmul.f32 %v73_v25, %v27_v10 }
 0x13b   :  { %62 = vst.msk [vmem:[%s121_s3] sm:$0xff] %vm16_vm0, %v60_v26  ;;  %v52_v28 = vmul.f32 %v68_v21, %v44_v27 }
 0x13d   :  { %v61_v29 = vadd.f32 %v69_v23, %v52_v28 }
 0x13f   :  { %63 = vst.msk [vmem:[%s121_s3 + $0x8] sm:$0xff] %vm16_vm0, %v61_v29 }

// kernel: _lambda_.13
= control target key start
LH: loop header
LB: loop body
LE: loop exit
PB: predicated region body
PF: predicated region fallthrough
CT: control target
= control target key end

     0   :  { %vm29_vm0 = vcmask 261120   ;;  %vm18_vm1 = vcmask 785408   ;;  %v165_v3 = vmov 0.0   ;;  %s221_s1 = inlined_call_operand.vmem [shape: f32[32,96], index: 1, kind: input, shape index: {}]   ;;  %s222_s0 = inlined_call_operand.vmem [shape: f32[16,32], index: 0, kind: input, shape index: {}]   ;;  %s223_s2 = inlined_call_operand.vmem [shape: f32[1,96], index: 2, kind: input, shape index: {}]   ;;  %s224_s3 = inlined_call_operand.vmem [shape: f32[16,96], index: 3, kind: output, shape index: {}]  }
   0x1   :  { %v25_v0 = vld [vmem:[%s221_s1] sm:$0xff]  ;;  %v26_v1 = vld [vmem:[%s221_s1 + $0x8] sm:$0xff]  ;;  %v27_v2 = vld [vmem:[%s221_s1 + $0x10] sm:$0xff]  ;;  %20 = vst.msk [vmem:[#allocation2 + $0x8] sm:$0xff] %vm18_vm1, %v165_v3 }
   0x2   :  { %19 = vst.msk [vmem:[#allocation2] sm:$0xff] %vm18_vm1, %v165_v3  ;;  %v156_v4 = vpack.c.bf16 %v26_v1, %v25_v0  ;;  %v28_v5 = vld [vmem:[%s221_s1 + $0x18] sm:$0xff]  ;;  %v23_v6 = vld [vmem:[%s222_s0] sm:$0xff]  ;;  %v24_v8 = vld [vmem:[%s222_s0 + $0x8] sm:$0xff] }
   0x3   :  { %v160_v7 = vpack.c.bf16 %v28_v5, %v27_v2  ;;  %153 = vmatprep.mubr.msk.f32.mxu0 %vm29_vm0, %v23_v6  ;;  %v138_v15 = vld [vmem:[%s223_s2] ss:$0 sm:$0xff] }
   0x4   :  { %157 = vmatprep.subr.bf16.mxu0 %v156_v4 }
   0x5   :  { %159 = vmatpush3.bf16.msra.mxu0 %v156_v4 }
   0x6   :  { %161 = vmatprep.subr.bf16.mxu0 %v160_v7 }
   0x8   :  { %v22_v9 = vld [vmem:[#allocation2 + $0x8] sm:$0xff] }
   0x9   :  { %163 = vmatpush3.bf16.msra.mxu0 %v160_v7  ;;  %v21_v10 = vld [vmem:[#allocation2] sm:$0xff] }
   0xc   :  { %154 = vmatmul.mubr.msk.f32.vlgmr.msra.gmra.mrb[0].mxu0 %vm29_vm0, %v24_v8 }
  0xdf   :  { %v155_v11 = vpop.f32.mrb[0].mxu0 }
  0xe0   :  { %v112_v12 = vadd.f32 %v155_v11, %v22_v9  ;;  %v102_v13 = vpop.f32.mrb[1].mxu0 }
  0xe1   :  { %v111_v14 = vadd.f32 %v102_v13, %v21_v10 }
  0xe2   :  { %115 = vst.msk [vmem:[#allocation2 + $0x8] sm:$0xff] %vm18_vm1, %v112_v12 }
  0xe3   :  { %114 = vst.msk [vmem:[#allocation2] sm:$0xff] %vm18_vm1, %v111_v14 }
  0xe9   :  { %v120_v16 = vld [vmem:[#allocation2 + $0x8] sm:$0xff] }
  0xea   :  { %v129_v17 = vadd.f32 %v138_v15, %v120_v16  ;;  %v119_v18 = vld [vmem:[#allocation2] sm:$0xff] }
  0xeb   :  { %v128_v19 = vadd.f32 %v138_v15, %v119_v18 }
  0xec   :  { %131 = vst.msk [vmem:[%s224_s3 + $0x8] sm:$0xff] %vm18_vm1, %v129_v17 }
  0xed   :  { %130 = vst.msk [vmem:[%s224_s3] sm:$0xff] %vm18_vm1, %v128_v19 }

// kernel: _lambda_.17
= control target key start
LH: loop header
LB: loop body
LE: loop exit
PB: predicated region body
PF: predicated region fallthrough
CT: control target
= control target key end

     0   :  { %vm18_vm0 = vcmask 261120   ;;  %v164_v3 = vmov 0.0   ;;  %s220_s1 = inlined_call_operand.vmem [shape: f32[32,32], index: 1, kind: input, shape index: {}]   ;;  %s221_s0 = inlined_call_operand.vmem [shape: f32[16,32], index: 0, kind: input, shape index: {}]   ;;  %s222_s2 = inlined_call_operand.vmem [shape: f32[1,32], index: 2, kind: input, shape index: {}]   ;;  %s223_s3 = inlined_call_operand.vmem [shape: f32[16,32], index: 3, kind: output, shape index: {}]  }
   0x1   :  { %v25_v0 = vld [vmem:[%s220_s1] sm:$0xff]  ;;  %v26_v1 = vld [vmem:[%s220_s1 + $0x8] sm:$0xff]  ;;  %v27_v2 = vld [vmem:[%s220_s1 + $0x10] sm:$0xff]  ;;  %20 = vst.msk [vmem:[#allocation2 + $0x8] sm:$0xff] %vm18_vm0, %v164_v3 }
   0x2   :  { %19 = vst.msk [vmem:[#allocation2] sm:$0xff] %vm18_vm0, %v164_v3  ;;  %v155_v4 = vpack.c.bf16 %v26_v1, %v25_v0  ;;  %v28_v5 = vld [vmem:[%s220_s1 + $0x18] sm:$0xff]  ;;  %v23_v6 = vld [vmem:[%s221_s0] sm:$0xff]  ;;  %v24_v8 = vld [vmem:[%s221_s0 + $0x8] sm:$0xff] }
   0x3   :  { %v159_v7 = vpack.c.bf16 %v28_v5, %v27_v2  ;;  %152 = vmatprep.mubr.msk.f32.mxu0 %vm18_vm0, %v23_v6  ;;  %v137_v15 = vld [vmem:[%s222_s2] ss:$0 sm:$0xff] }
   0x4   :  { %156 = vmatprep.subr.bf16.mxu0 %v155_v4 }
   0x5   :  { %158 = vmatpush3.bf16.msra.mxu0 %v155_v4 }
   0x6   :  { %160 = vmatprep.subr.bf16.mxu0 %v159_v7 }
   0x8   :  { %v22_v9 = vld [vmem:[#allocation2 + $0x8] sm:$0xff] }
   0x9   :  { %162 = vmatpush3.bf16.msra.mxu0 %v159_v7  ;;  %v21_v10 = vld [vmem:[#allocation2] sm:$0xff] }
   0xc   :  { %153 = vmatmul.mubr.msk.f32.vlgmr.msra.gmra.mrb[0].mxu0 %vm18_vm0, %v24_v8 }
  0xdf   :  { %v154_v11 = vpop.f32.mrb[0].mxu0 }
  0xe0   :  { %v112_v12 = vadd.f32 %v154_v11, %v22_v9  ;;  %v102_v13 = vpop.f32.mrb[1].mxu0 }
  0xe1   :  { %v111_v14 = vadd.f32 %v102_v13, %v21_v10 }
  0xe2   :  { %114 = vst.msk [vmem:[#allocation2 + $0x8] sm:$0xff] %vm18_vm0, %v112_v12 }
  0xe3   :  { %113 = vst.msk [vmem:[#allocation2] sm:$0xff] %vm18_vm0, %v111_v14 }
  0xe9   :  { %v119_v16 = vld [vmem:[#allocation2 + $0x8] sm:$0xff] }
  0xea   :  { %v128_v17 = vadd.f32 %v137_v15, %v119_v16  ;;  %v118_v18 = vld [vmem:[#allocation2] sm:$0xff] }
  0xeb   :  { %v127_v19 = vadd.f32 %v137_v15, %v118_v18 }
  0xec   :  { %130 = vst.msk [vmem:[%s223_s3 + $0x8] sm:$0xff] %vm18_vm0, %v128_v17 }
  0xed   :  { %129 = vst.msk [vmem:[%s223_s3] sm:$0xff] %vm18_vm0, %v127_v19 }

// kernel: _lambda_.14
= control target key start
LH: loop header
LB: loop body
LE: loop exit
PB: predicated region body
PF: predicated region fallthrough
CT: control target
= control target key end

     0   :  { %s1265_s15 = smov 0   ;;  %s1267_s16 = smov 0   ;;  %s1368_s0 = inlined_call_operand.vmem [shape: f32[2,8,96], index: 0, kind: input, shape index: {}, may-alias: {0,1,2}]   ;;  %s1369_s1 = inlined_call_operand.vmem [shape: f32[2,8,96], index: 1, kind: input, shape index: {}, may-alias: {0,1,2}]   ;;  %s1370_s2 = inlined_call_operand.vmem [shape: f32[2,8,96], index: 2, kind: input, shape index: {}, may-alias: {0,1,2}]   ;;  %s1371_s3 = inlined_call_operand.vmem [shape: f32[2,8,8], index: 3, kind: input, shape index: {}]   ;;  %s1372_s4 = inlined_call_operand.vmem [shape: f32[2,8,32], index: 4, kind: output, shape index: {}]  }
   0x1   :  { %s1269_s17 = smov 0  }
   0x2 LB: > { %s26_s18 = sadd.s32 1, %s1218_s16  ;;  %p1068_p0 = scmp.ge.s32.totalorder %s1222_s17, 1  ;;  %s1222_s17 = sphi %s1269_s17, %s14_s17   ;;  %s1218_s16 = sphi %s1267_s16, %s1374_s16   ;;  %s1214_s15 = sphi %s1265_s15, %s1373_s15  }
   0x3   : > { %p28_p1 = scmp.ge.s32.totalorder %s26_s18, 2  ;;  %p202_p2 = scmp.lt.s32.totalorder %s1222_s17, 3 }
   0x5   : > { %s1376_s18 = smov (%p28_p1, %s26_s18), 0  ;;  %p203_p3 = pnand %p1068_p0, %p202_p2 }
   0x6   : > { %p241_p4 = scmp.lt.s32.totalorder (!%p203_p3), %s1214_s15, 1  ;;  %v1224_v0 = vmov (!%p203_p3), 0.0   ;;  %vm1225_vm0 = vmmov (!%p203_p3), 0   ;;  %s1226_s23 = smov (!%p203_p3), 96   ;;  %vm271_vm1 = vcmask (!%p203_p3), 64512   ;;  %vm951_vm2 = vcmask (!%p203_p3), 130048  }
   0x7   : > { %206 = sbr.rel (%p203_p3) target bundleno = 1537 (0x601), region = 36  ;;  %1104 = vmatprep.subr.mxu0 (!%p203_p3), %v1224_v0  ;;  %1106 = vmatprep.mubr.msk.f32.mxu0 (!%p203_p3), %vm1225_vm0, %v1224_v0  ;;  %s1227_s30 = smov (!%p203_p3), 64   ;;  %vm953_vm3 = vcmask (!%p203_p3), 195584   ;;  %vm955_vm4 = vcmask (!%p203_p3), 261120  }
   0x8   : > { %1109 = vmatprep.subr.mxu1 (!%p203_p3), %v1224_v0  ;;  %1111 = vmatprep.mubr.msk.f32.mxu1 (!%p203_p3), %vm1225_vm0, %v1224_v0  ;;  %s1228_s5 = smov (!%p203_p3), 88   ;;  %s1229_s6 = smov (!%p203_p3), 120  }
   0x9   : > { %s1230_s7 = smov (!%p203_p3), 80   ;;  %s1231_s11 = smov (!%p203_p3), 72  }
   0xa   : > { %s1232_s12 = smov (!%p203_p3), 112   ;;  %s1233_s13 = smov (!%p203_p3), 104  }
   0xb   : > { %s1234_s14 = smov (!%p203_p3), 56   ;;  %s1236_s20 = smov (!%p203_p3), 48  }
   0xc   : > { %s1237_s21 = smov (!%p203_p3), 8  }
   0xe   : > { %s1378_s15 = smov (!%p241_p4, %s1214_s15), 1 }
   0xf   : > { %s1289_s19 = sshll.u32 %s1378_s15, 3  ;;  %s1235_s15 = smov 40  }
  0x10   : > { %s248_s22 = scalar_lea.vmem %s1369_s1, %s1289_s19  ;;  %s244_s26 = scalar_lea.vmem %s1368_s0, %s1289_s19 }
  0x11   : > { %v265_v1 = vld [vmem:[%s248_s22] sm:$0xff]  ;;  %s252_s29 = scalar_lea.vmem %s1370_s2, %s1289_s19  ;;  %s256_s10 = scalar_lea.vmem %s1371_s3, %s1289_s19 }
  0x12   : > { %269 = vrot.lane.b32.xlu0 %v265_v1, %s1226_s23  ;;  %v264_v3 = vld [vmem:[%s244_s26] sm:$0xff]  ;;  %s1238_s22 = smov 16   ;;  %s1239_s23 = smov 24  }
  0x13   : > { %v1308_v4 = vld [vmem:[%s252_s29] sm:$0xff]  ;;  %s263_s26 = scalar_lea.vmem %s1372_s4, %s1289_s19 }
  0x14   : > { %361 = vrot.lane.b32.xlu1 %v1308_v4, %s1227_s30  ;;  %v267_v6 = vld [vmem:[%s256_s10] sm:$0xff] }
  0x18   : > { %439 = vrot.lane.b32.xlu1 %v265_v1, %s1228_s5 }
  0x1c   : > { %437 = vrot.lane.b32.xlu1 %v264_v3, %s1229_s6 }
  0x20   : > { %606 = vrot.lane.b32.xlu1 %v265_v1, %s1230_s7 }
  0x84   : > { %v270_v2 = vpop.permute.xlu0 %269 }
  0x85   : > { %1105 = vmatpush3.xpose.msk.msra.mxu0 %vm271_vm1, %v270_v2 }
  0x86   : > { %1119 = vmatprep.subr.mxu0 %v1224_v0  ;;  %v362_v11 = vpop.permute.xlu1 %361 }
  0x87   : > { %1110 = vmatpush3.msra.mxu1 %v362_v11 }
  0x88   : > { %1107 = vmatmul.mubr.msk.f32.vlgmr.msra.gmra.mrb[0].mxu0 %vm271_vm1, %v264_v3  ;;  %1114 = vmatprep.subr.mxu1 %v1224_v0 }
  0x89   : > { %1121 = vmatprep.mubr.msk.f32.mxu0 %vm1225_vm0, %v1224_v0 }
  0x8a   : > { %v440_v17 = vpop.permute.xlu1 %439 }
  0x8e   : > { %v438_v18 = vpop.permute.xlu1 %437 }
  0x92   : > { %v607_v19 = vpop.permute.xlu1 %606 }
 0x15b   : > { %v343_v5 = vpop.f32.mrb[0].mxu0 }
 0x15c   : > { %v347_v7 = vmul.f32 0.35355338, %v343_v5  ;;  %v1108_v8 = vpop.f32.mrb[1].mxu0 }
 0x15e   : > { %v348_v9 = vadd.f32 %v347_v7, %v267_v6 }
 0x160   : > { %v349_v10 = vsel %vm271_vm1, %v348_v9, -inf }
 0x161   : > { %350 = vmax.xlane.f32.xlu0 %v349_v10 }
 0x177   : > { %773 = vrot.lane.b32.xlu0 %v265_v1, %s1231_s11 }
 0x1ee   : > { %v351_v12 = vpop.xlane.xlu0 %350 }
 0x1ef   : > { %v352_v13 = vsub.f32 %v348_v9, %v351_v12 }
 0x1f1   : > { %v353_v14 = vmul.f32 1.442695, %v352_v13 }
 0x1f2   : > { %v774_v24 = vpop.permute.xlu0 %773 }
 0x1f3   : > { %1184 = vpow2.f32 %v353_v14 }
 0x1fd   : > { %v1185_v15 = vpop.eup %1184 }
 0x1fe   : > { %v355_v16 = vsel %vm271_vm1, %v1185_v15, 0.0 }
 0x1ff   : > { %356 = vadd.xlane.f32.xlu1 %v355_v16 }
 0x210   : > { %604 = vrot.lane.b32.xlu1 %v264_v3, %s1232_s12 }
 0x214   : > { %771 = vrot.lane.b32.xlu1 %v264_v3, %s1233_s13 }
 0x28c   : > { %v357_v20 = vpop.xlane.xlu1 %356 }
 0x28d   : > { %1186 = vrcp.f32 %v357_v20 }
 0x290   : > { %v605_v23 = vpop.permute.xlu1 %604 }
 0x294   : > { %v772_v25 = vpop.permute.xlu1 %771 }
 0x297   : > { %v1187_v21 = vpop.eup %1186 }
 0x298   : > { %v359_v22 = vmul.f32 %v1187_v21, %v1185_v15 }
 0x29a   : > { %1112 = vmatmul.mubr.msk.f32.vlgmr.msra.gmra.mrb[0].mxu1 %vm271_vm1, %v359_v22 }
 0x29b   : > { %1115 = vmatpush3.xpose.msk.msra.mxu1 %vm271_vm1, %v440_v17  ;;  %1116 = vmatprep.mubr.msk.f32.mxu1 %vm1225_vm0, %v1224_v0 }
 0x29c   : > { %1124 = vmatprep.subr.mxu1 %v1224_v0 }
 0x29e   : > { %1117 = vmatmul.mubr.msk.f32.vlgmr.msra.gmra.mrb[2].mxu1 %vm271_vm1, %v438_v18 }
 0x29f   : > { %1125 = vmatpush3.xpose.msk.msra.mxu1 %vm271_vm1, %v607_v19  ;;  %1126 = vmatprep.mubr.msk.f32.mxu1 %vm1225_vm0, %v1224_v0 }
 0x2a0   : > { %1134 = vmatprep.subr.mxu1 %v1224_v0 }
 0x2a2   : > { %1127 = vmatmul.mubr.msk.f32.vlgmr.msra.gmra.mrb[4].mxu1 %vm271_vm1, %v605_v23 }
 0x2a3   : > { %1135 = vmatpush3.xpose.msk.msra.mxu1 %vm271_vm1, %v774_v24  ;;  %1136 = vmatprep.mubr.msk.f32.mxu1 %vm1225_vm0, %v1224_v0 }
 0x2a6   : > { %1137 = vmatmul.mubr.msk.f32.vlgmr.msra.gmra.mrb[6].mxu1 %vm271_vm1, %v772_v25 }
 0x36d   : > { %v1333_v26 = vpop.f32.mrb[0].mxu1 }
 0x36e   : > { %v1113_v27 = vpop.f32.mrb[1].mxu1 }
 0x371   : > { %v511_v28 = vpop.f32.mrb[2].mxu1 }
 0x372   : > { %v515_v29 = vmul.f32 0.35355338, %v511_v28  ;;  %v1118_v30 = vpop.f32.mrb[3].mxu1 }
 0x374   : > { %v516_v31 = vadd.f32 %v515_v29, %v267_v6 }
 0x375   : > { %v678_v32 = vpop.f32.mrb[4].mxu1 }
 0x376   : > { %v682_v33 = vmul.f32 0.35355338, %v678_v32  ;;  %v1128_v34 = vpop.f32.mrb[5].mxu1  ;;  %v517_v35 = vsel %vm271_vm1, %v516_v31, -inf }
 0x377   : > { %518 = vmax.xlane.f32.xlu1 %v517_v35 }
 0x378   : > { %v683_v36 = vadd.f32 %v682_v33, %v267_v6 }
 0x379   : > { %v845_v37 = vpop.f32.mrb[6].mxu1 }
 0x37a   : > { %v849_v38 = vmul.f32 0.35355338, %v845_v37  ;;  %v1138_v39 = vpop.f32.mrb[7].mxu1  ;;  %v684_v40 = vsel %vm271_vm1, %v683_v36, -inf }
 0x37b   : > { %685 = vmax.xlane.f32.xlu0 %v684_v40 }
 0x37c   : > { %v850_v41 = vadd.f32 %v849_v38, %v267_v6 }
 0x37e   : > { %v851_v42 = vsel %vm271_vm1, %v850_v41, -inf }
 0x37f   : > { %852 = vmax.xlane.f32.xlu1 %v851_v42 }
 0x390   : > { %528 = vrot.lane.b32.xlu1 %v1308_v4, %s1234_s14 }
 0x404   : > { %v519_v43 = vpop.xlane.xlu1 %518 }
 0x405   : > { %v520_v44 = vsub.f32 %v516_v31, %v519_v43 }
 0x407   : > { %v521_v45 = vmul.f32 1.442695, %v520_v44 }
 0x408   : > { %v686_v46 = vpop.xlane.xlu0 %685 }
 0x409   : > { %1188 = vpow2.f32 %v521_v45  ;;  %v687_v47 = vsub.f32 %v683_v36, %v686_v46 }
 0x40b   : > { %v688_v48 = vmul.f32 1.442695, %v687_v47 }
 0x40c   : > { %v853_v49 = vpop.xlane.xlu1 %852 }
 0x40d   : > { %1190 = vpow2.f32 %v688_v48  ;;  %v854_v50 = vsub.f32 %v850_v41, %v853_v49 }
 0x40f   : > { %v855_v51 = vmul.f32 1.442695, %v854_v50 }
 0x410   : > { %v529_v52 = vpop.permute.xlu1 %528 }
 0x411   : > { %1192 = vpow2.f32 %v855_v51  ;;  %1120 = vmatpush3.msra.mxu0 %v529_v52 }
 0x412   : > { %1129 = vmatprep.subr.mxu0 %v1224_v0 }
 0x413   : > { %v1189_v53 = vpop.eup %1188 }
 0x414   : > { %v523_v54 = vsel %vm271_vm1, %v1189_v53, 0.0 }
 0x415   : > { %524 = vadd.xlane.f32.xlu1 %v523_v54 }
 0x417   : > { %v1191_v55 = vpop.eup %1190 }
 0x418   : > { %v690_v56 = vsel %vm271_vm1, %v1191_v55, 0.0 }
 0x419   : > { %691 = vadd.xlane.f32.xlu1 %v690_v56 }
 0x41b   : > { %v1193_v57 = vpop.eup %1192 }
 0x41c   : > { %v857_v58 = vsel %vm271_vm1, %v1193_v57, 0.0 }
 0x41d   : > { %858 = vadd.xlane.f32.xlu0 %v857_v58 }
 0x42a   : > { %862 = vrot.lane.b32.xlu1 %v1308_v4, %s1235_s15 }
 0x433   : > { %695 = vrot.lane.b32.xlu0 %v1308_v4, %s1236_s20 }
 0x4a2   : > { %v525_v59 = vpop.xlane.xlu1 %524 }
 0x4a3   : > { %1194 = vrcp.f32 %v525_v59 }
 0x4a6   : > { %v692_v60 = vpop.xlane.xlu1 %691 }
 0x4a7   : > { %1196 = vrcp.f32 %v692_v60 }
 0x4aa   : > { %v859_v61 = vpop.xlane.xlu0 %858  ;;  %v863_v5 = vpop.permute.xlu1 %862 }
 0x4ab   : > { %1198 = vrcp.f32 %v859_v61 }
 0x4ad   : > { %v1195_v62 = vpop.eup %1194 }
 0x4ae   : > { %v527_v63 = vmul.f32 %v1195_v62, %v1189_v53  ;;  %v696_v1 = vpop.permute.xlu0 %695 }
 0x4b0   : > { %1122 = vmatmul.mubr.msk.f32.vlgmr.msra.gmra.mrb[2].mxu0 %vm271_vm1, %v527_v63 }
 0x4b1   : > { %v1197_v2 = vpop.eup %1196  ;;  %1130 = vmatpush3.msra.mxu0 %v696_v1  ;;  %1131 = vmatprep.mubr.msk.f32.mxu0 %vm1225_vm0, %v1224_v0 }
 0x4b2   : > { %v694_v3 = vmul.f32 %v1197_v2, %v1191_v55  ;;  %1139 = vmatprep.subr.mxu0 %v1224_v0 }
 0x4b4   : > { %1132 = vmatmul.mubr.msk.f32.vlgmr.msra.gmra.mrb[4].mxu0 %vm271_vm1, %v694_v3 }
 0x4b5   : > { %v1199_v4 = vpop.eup %1198  ;;  %1140 = vmatpush3.msra.mxu0 %v863_v5  ;;  %1141 = vmatprep.mubr.msk.f32.mxu0 %vm1225_vm0, %v1224_v0 }
 0x4b6   : > { %v861_v6 = vmul.f32 %v1199_v4, %v1193_v57 }
 0x4b8   : > { %1142 = vmatmul.mubr.msk.f32.vlgmr.msra.gmra.mrb[6].mxu0 %vm271_vm1, %v861_v6 }
 0x583   : > { %v600_v7 = vpop.f32.mrb[2].mxu0 }
 0x584   : > { %939 = vrot.lane.b32.xlu1 %v600_v7, %s1237_s21  ;;  %v1123_v8 = vpop.f32.mrb[3].mxu0 }
 0x587   : > { %v767_v9 = vpop.f32.mrb[4].mxu0 }
 0x588   : > { %943 = vrot.lane.b32.xlu0 %v767_v9, %s1238_s22  ;;  %v1133_v10 = vpop.f32.mrb[5].mxu0 }
 0x58b   : > { %v934_v11 = vpop.f32.mrb[6].mxu0 }
 0x58c   : > { %947 = vrot.lane.b32.xlu1 %v934_v11, %s1239_s23  ;;  %v1143_v12 = vpop.f32.mrb[7].mxu0 }
 0x5f6   : > { %v940_v13 = vpop.permute.xlu1 %939 }
 0x5f7   : > { %v950_v0 = vsel %vm271_vm1, %v1333_v26, %v940_v13 }
 0x5fa   : > { %v944_v14 = vpop.permute.xlu0 %943 }
 0x5fb   : > { %v952_v15 = vsel %vm951_vm2, %v950_v0, %v944_v14 }
 0x5fe   : > { %v948_v16 = vpop.permute.xlu1 %947 }
 0x5ff   : > { %v954_v17 = vsel %vm953_vm3, %v952_v15, %v948_v16 }
 0x600   : > { %956 = vst.msk [vmem:[%s263_s26] sm:$0xff] %vm955_vm4, %v954_v17 }
 0x601 PF: > { %s14_s17 = sadd.s32 1, %s1222_s17   ;;  %s1373_s15 = smov %s1218_s16 }
 0x602   : > { %p11_p5 = scmp.ge.s32.totalorder %s14_s17, 4   ;;  %s1374_s16 = smov %s1376_s18 }
 0x604   :  { %13 = sbr.rel (!%p11_p5) target bundleno = 2 (0x2), region = 75 }

// kernel: _lambda_.15
= control target key start
LH: loop header
LB: loop body
LE: loop exit
PB: predicated region body
PF: predicated region fallthrough
CT: control target
= control target key end

     0   :  { %vm21_vm0 = vcmask 261120   ;;  %v171_v3 = vmov 0.0   ;;  %s238_s1 = inlined_call_operand.vmem [shape: f32[32,32], index: 1, kind: input, shape index: {}]   ;;  %s239_s0 = inlined_call_operand.vmem [shape: f32[16,32], index: 0, kind: input, shape index: {}]   ;;  %s240_s2 = inlined_call_operand.vmem [shape: f32[1,32], index: 2, kind: input, shape index: {}]   ;;  %s241_s3 = inlined_call_operand.vmem [shape: f32[16,32], index: 3, kind: input, shape index: {}]   ;;  %s242_s4 = inlined_call_operand.vmem [shape: f32[16,32], index: 4, kind: output, shape index: {}]  }
   0x1   :  { %v28_v0 = vld [vmem:[%s238_s1] sm:$0xff]  ;;  %v29_v1 = vld [vmem:[%s238_s1 + $0x8] sm:$0xff]  ;;  %v30_v2 = vld [vmem:[%s238_s1 + $0x10] sm:$0xff]  ;;  %23 = vst.msk [vmem:[#allocation2 + $0x8] sm:$0xff] %vm21_vm0, %v171_v3 }
   0x2   :  { %22 = vst.msk [vmem:[#allocation2] sm:$0xff] %vm21_vm0, %v171_v3  ;;  %v162_v4 = vpack.c.bf16 %v29_v1, %v28_v0  ;;  %v31_v5 = vld [vmem:[%s238_s1 + $0x18] sm:$0xff]  ;;  %v26_v6 = vld [vmem:[%s239_s0] sm:$0xff]  ;;  %v27_v8 = vld [vmem:[%s239_s0 + $0x8] sm:$0xff] }
   0x3   :  { %v166_v7 = vpack.c.bf16 %v31_v5, %v30_v2  ;;  %159 = vmatprep.mubr.msk.f32.mxu0 %vm21_vm0, %v26_v6  ;;  %v144_v15 = vld [vmem:[%s240_s2] ss:$0 sm:$0xff]  ;;  %v133_v17 = vld [vmem:[%s241_s3 + $0x8] sm:$0xff] }
   0x4   :  { %163 = vmatprep.subr.bf16.mxu0 %v162_v4  ;;  %v132_v20 = vld [vmem:[%s241_s3] sm:$0xff] }
   0x5   :  { %165 = vmatpush3.bf16.msra.mxu0 %v162_v4 }
   0x6   :  { %167 = vmatprep.subr.bf16.mxu0 %v166_v7 }
   0x8   :  { %v25_v9 = vld [vmem:[#allocation2 + $0x8] sm:$0xff] }
   0x9   :  { %169 = vmatpush3.bf16.msra.mxu0 %v166_v7  ;;  %v24_v10 = vld [vmem:[#allocation2] sm:$0xff] }
   0xc   :  { %160 = vmatmul.mubr.msk.f32.vlgmr.msra.gmra.mrb[0].mxu0 %vm21_vm0, %v27_v8 }
  0xdf   :  { %v161_v11 = vpop.f32.mrb[0].mxu0 }
  0xe0   :  { %v115_v12 = vadd.f32 %v161_v11, %v25_v9  ;;  %v105_v13 = vpop.f32.mrb[1].mxu0 }
  0xe1   :  { %v114_v14 = vadd.f32 %v105_v13, %v24_v10 }
  0xe2   :  { %117 = vst.msk [vmem:[#allocation2 + $0x8] sm:$0xff] %vm21_vm0, %v115_v12 }
  0xe3   :  { %116 = vst.msk [vmem:[#allocation2] sm:$0xff] %vm21_vm0, %v114_v14 }
  0xe9   :  { %v122_v16 = vld [vmem:[#allocation2 + $0x8] sm:$0xff] }
  0xea   :  { %v131_v18 = vadd.f32 %v144_v15, %v122_v16  ;;  %v121_v19 = vld [vmem:[#allocation2] sm:$0xff] }
  0xeb   :  { %v130_v21 = vadd.f32 %v144_v15, %v121_v19 }
  0xec   :  { %v135_v22 = vadd.f32 %v133_v17, %v131_v18 }
  0xed   :  { %v134_v23 = vadd.f32 %v132_v20, %v130_v21 }
  0xee   :  { %137 = vst.msk [vmem:[%s242_s4 + $0x8] sm:$0xff] %vm21_vm0, %v135_v22 }
  0xef   :  { %136 = vst.msk [vmem:[%s242_s4] sm:$0xff] %vm21_vm0, %v134_v23 }

// kernel: _lambda_.19
= control target key start
LH: loop header
LB: loop body
LE: loop exit
PB: predicated region body
PF: predicated region fallthrough
CT: control target
= control target key end

     0   :  { %s1255_s15 = smov 0   ;;  %s1257_s16 = smov 0   ;;  %s1363_s0 = inlined_call_operand.vmem [shape: f32[2,8,32], index: 0, kind: input, shape index: {}]   ;;  %s1364_s1 = inlined_call_operand.vmem [shape: f32[2,8,64], index: 1, kind: input, shape index: {}, may-alias: {1,2}]   ;;  %s1365_s2 = inlined_call_operand.vmem [shape: f32[2,8,64], index: 2, kind: input, shape index: {}, may-alias: {1,2}]   ;;  %s1366_s3 = inlined_call_operand.vmem [shape: f32[2,1,8], index: 3, kind: input, shape index: {}]   ;;  %s1367_s4 = inlined_call_operand.vmem [shape: f32[2,8,32], index: 4, kind: output, shape index: {}]  }
   0x1   :  { %s1259_s17 = smov 0  }
   0x2 LB: > { %s26_s18 = sadd.s32 1, %s1212_s16  ;;  %p1066_p0 = scmp.ge.s32.totalorder %s1216_s17, 1  ;;  %s1216_s17 = sphi %s1259_s17, %s14_s17   ;;  %s1212_s16 = sphi %s1257_s16, %s1369_s16   ;;  %s1208_s15 = sphi %s1255_s15, %s1368_s15  }
   0x3   : > { %p28_p1 = scmp.ge.s32.totalorder %s26_s18, 2  ;;  %p201_p2 = scmp.lt.s32.totalorder %s1216_s17, 3 }
   0x5   : > { %s1371_s18 = smov (%p28_p1, %s26_s18), 0  ;;  %p202_p3 = pnand %p1066_p0, %p201_p2 }
   0x6   : > { %p239_p4 = scmp.lt.s32.totalorder (!%p202_p3), %s1208_s15, 1  ;;  %v1218_v0 = vmov (!%p202_p3), 0.0   ;;  %vm1219_vm0 = vmmov (!%p202_p3), 0   ;;  %vm265_vm1 = vcmask (!%p202_p3), 64512   ;;  %s1220_s6 = smov (!%p202_p3), 96   ;;  %vm952_vm2 = vcmask (!%p202_p3), 130048  }
   0x7   : > { %205 = sbr.rel (%p202_p3) target bundleno = 1422 (0x58e), region = 36  ;;  %1102 = vmatprep.subr.mxu0 (!%p202_p3), %v1218_v0  ;;  %1104 = vmatprep.mubr.msk.f32.mxu0 (!%p202_p3), %vm1219_vm0, %v1218_v0  ;;  %s1221_s7 = smov (!%p202_p3), 120   ;;  %vm954_vm3 = vcmask (!%p202_p3), 195584   ;;  %vm956_vm4 = vcmask (!%p202_p3), 261120  }
   0x8   : > { %1107 = vmatprep.subr.mxu1 (!%p202_p3), %v1218_v0  ;;  %1109 = vmatprep.mubr.msk.f32.mxu1 (!%p202_p3), %vm1219_vm0, %v1218_v0  ;;  %s1222_s8 = smov (!%p202_p3), 112   ;;  %s1223_s9 = smov (!%p202_p3), 104  }
   0x9   : > { %s1224_s10 = smov (!%p202_p3), 88   ;;  %s1225_s11 = smov (!%p202_p3), 72  }
   0xa   : > { %s1226_s12 = smov (!%p202_p3), 80   ;;  %s1227_s13 = smov (!%p202_p3), 8  }
   0xb   : > { %s1228_s14 = smov (!%p202_p3), 16  }
   0xe   : > { %s1373_s15 = smov (!%p239_p4, %s1208_s15), 1 }
   0xf   : > { %s1279_s19 = sshll.u32 %s1373_s15, 3  ;;  %s253_s28 = scalar_lea.vmem %s1366_s3, %s1373_s15 }
  0x10   : > { %s246_s22 = scalar_lea.vmem %s1364_s1, %s1279_s19  ;;  %s242_s25 = scalar_lea.vmem %s1363_s0, %s1279_s19  ;;  %v1297_v4 = vld [vmem:[%s253_s28] ss:$0 sm:$0xff] }
  0x11   : > { %v262_v1 = vld [vmem:[%s246_s22] sm:$0xff]  ;;  %s250_s5 = scalar_lea.vmem %s1365_s2, %s1279_s19  ;;  %s1229_s15 = smov 24  }
  0x12   : > { %1103 = vmatpush3.xpose.msk.msra.mxu0 %vm265_vm1, %v262_v1  ;;  %v261_v2 = vld [vmem:[%s242_s25] sm:$0xff]  ;;  %s260_s22 = scalar_lea.vmem %s1367_s4, %s1279_s19 }
  0x13   : > { %1117 = vmatprep.subr.mxu0 %v1218_v0  ;;  %v1305_v9 = vld [vmem:[%s250_s5] sm:$0xff] }
  0x14   : > { %362 = vrot.lane.b32.xlu1 %v1305_v9, %s1220_s6 }
  0x15   : > { %1105 = vmatmul.mubr.msk.f32.vlgmr.msra.gmra.mrb[0].mxu0 %vm265_vm1, %v261_v2 }
  0x16   : > { %1119 = vmatprep.mubr.msk.f32.mxu0 %vm1219_vm0, %v1218_v0 }
  0x18   : > { %440 = vrot.lane.b32.xlu1 %v262_v1, %s1221_s7 }
  0x1c   : > { %607 = vrot.lane.b32.xlu1 %v262_v1, %s1222_s8 }
  0x20   : > { %605 = vrot.lane.b32.xlu1 %v261_v2, %s1222_s8 }
  0x24   : > { %774 = vrot.lane.b32.xlu1 %v262_v1, %s1223_s9 }
  0x28   : > { %772 = vrot.lane.b32.xlu1 %v261_v2, %s1223_s9 }
  0x86   : > { %v363_v15 = vpop.permute.xlu1 %362 }
  0x87   : > { %1108 = vmatpush3.msra.mxu1 %v363_v15 }
  0x88   : > { %1112 = vmatprep.subr.mxu1 %v1218_v0 }
  0x8a   : > { %v441_v16 = vpop.permute.xlu1 %440 }
  0x8e   : > { %v608_v18 = vpop.permute.xlu1 %607 }
  0x92   : > { %v606_v20 = vpop.permute.xlu1 %605 }
  0x96   : > { %v775_v23 = vpop.permute.xlu1 %774 }
  0x9a   : > { %v773_v24 = vpop.permute.xlu1 %772 }
  0xe8   : > { %v338_v3 = vpop.f32.mrb[0].mxu0 }
  0xe9   : > { %v342_v5 = vmul.f32 0.35355338, %v338_v3  ;;  %v1106_v6 = vpop.f32.mrb[1].mxu0 }
  0xeb   : > { %v349_v7 = vadd.f32 %v1297_v4, %v342_v5 }
  0xed   : > { %v350_v8 = vsel %vm265_vm1, %v349_v7, -inf }
  0xee   : > { %351 = vmax.xlane.f32.xlu0 %v350_v8 }
 0x17b   : > { %v352_v10 = vpop.xlane.xlu0 %351 }
 0x17c   : > { %v353_v11 = vsub.f32 %v349_v7, %v352_v10 }
 0x17e   : > { %v354_v12 = vmul.f32 1.442695, %v353_v11 }
 0x180   : > { %1178 = vpow2.f32 %v354_v12 }
 0x18a   : > { %v1179_v13 = vpop.eup %1178 }
 0x18b   : > { %v356_v14 = vsel %vm265_vm1, %v1179_v13, 0.0 }
 0x18c   : > { %357 = vadd.xlane.f32.xlu0 %v356_v14 }
 0x1a2   : > { %438 = vrot.lane.b32.xlu0 %v261_v2, %s1221_s7 }
 0x219   : > { %v358_v17 = vpop.xlane.xlu0 %357 }
 0x21a   : > { %1180 = vrcp.f32 %v358_v17 }
 0x21d   : > { %v439_v22 = vpop.permute.xlu0 %438 }
 0x224   : > { %v1181_v19 = vpop.eup %1180 }
 0x225   : > { %v360_v21 = vmul.f32 %v1181_v19, %v1179_v13 }
 0x227   : > { %1110 = vmatmul.mubr.msk.f32.vlgmr.msra.gmra.mrb[0].mxu1 %vm265_vm1, %v360_v21 }
 0x228   : > { %1113 = vmatpush3.xpose.msk.msra.mxu1 %vm265_vm1, %v441_v16  ;;  %1114 = vmatprep.mubr.msk.f32.mxu1 %vm1219_vm0, %v1218_v0 }
 0x229   : > { %1122 = vmatprep.subr.mxu1 %v1218_v0 }
 0x22b   : > { %1115 = vmatmul.mubr.msk.f32.vlgmr.msra.gmra.mrb[2].mxu1 %vm265_vm1, %v439_v22 }
 0x22c   : > { %1123 = vmatpush3.xpose.msk.msra.mxu1 %vm265_vm1, %v608_v18  ;;  %1124 = vmatprep.mubr.msk.f32.mxu1 %vm1219_vm0, %v1218_v0 }
 0x22d   : > { %1132 = vmatprep.subr.mxu1 %v1218_v0 }
 0x22f   : > { %1125 = vmatmul.mubr.msk.f32.vlgmr.msra.gmra.mrb[4].mxu1 %vm265_vm1, %v606_v20 }
 0x230   : > { %1133 = vmatpush3.xpose.msk.msra.mxu1 %vm265_vm1, %v775_v23  ;;  %1134 = vmatprep.mubr.msk.f32.mxu1 %vm1219_vm0, %v1218_v0 }
 0x233   : > { %1135 = vmatmul.mubr.msk.f32.vlgmr.msra.gmra.mrb[6].mxu1 %vm265_vm1, %v773_v24 }
 0x2fa   : > { %v1325_v25 = vpop.f32.mrb[0].mxu1 }
 0x2fb   : > { %v1111_v26 = vpop.f32.mrb[1].mxu1 }
 0x2fe   : > { %v512_v27 = vpop.f32.mrb[2].mxu1 }
 0x2ff   : > { %v516_v28 = vmul.f32 0.35355338, %v512_v27  ;;  %v1116_v29 = vpop.f32.mrb[3].mxu1 }
 0x301   : > { %v517_v30 = vadd.f32 %v1297_v4, %v516_v28 }
 0x302   : > { %v679_v31 = vpop.f32.mrb[4].mxu1 }
 0x303   : > { %v683_v32 = vmul.f32 0.35355338, %v679_v31  ;;  %v1126_v33 = vpop.f32.mrb[5].mxu1  ;;  %v518_v34 = vsel %vm265_vm1, %v517_v30, -inf }
 0x304   : > { %519 = vmax.xlane.f32.xlu1 %v518_v34 }
 0x305   : > { %v684_v35 = vadd.f32 %v1297_v4, %v683_v32 }
 0x306   : > { %v846_v36 = vpop.f32.mrb[6].mxu1 }
 0x307   : > { %v850_v37 = vmul.f32 0.35355338, %v846_v36  ;;  %v1136_v38 = vpop.f32.mrb[7].mxu1  ;;  %v685_v39 = vsel %vm265_vm1, %v684_v35, -inf }
 0x308   : > { %686 = vmax.xlane.f32.xlu0 %v685_v39 }
 0x309   : > { %v851_v40 = vadd.f32 %v1297_v4, %v850_v37 }
 0x30b   : > { %v852_v41 = vsel %vm265_vm1, %v851_v40, -inf }
 0x30c   : > { %853 = vmax.xlane.f32.xlu1 %v852_v41 }
 0x31d   : > { %529 = vrot.lane.b32.xlu1 %v1305_v9, %s1224_s10 }
 0x391   : > { %v520_v42 = vpop.xlane.xlu1 %519 }
 0x392   : > { %v521_v43 = vsub.f32 %v517_v30, %v520_v42 }
 0x394   : > { %v522_v44 = vmul.f32 1.442695, %v521_v43 }
 0x395   : > { %v687_v45 = vpop.xlane.xlu0 %686 }
 0x396   : > { %1182 = vpow2.f32 %v522_v44  ;;  %v688_v46 = vsub.f32 %v684_v35, %v687_v45 }
 0x398   : > { %v689_v47 = vmul.f32 1.442695, %v688_v46 }
 0x399   : > { %v854_v48 = vpop.xlane.xlu1 %853 }
 0x39a   : > { %1184 = vpow2.f32 %v689_v47  ;;  %v855_v49 = vsub.f32 %v851_v40, %v854_v48 }
 0x39c   : > { %v856_v50 = vmul.f32 1.442695, %v855_v49 }
 0x39d   : > { %v530_v51 = vpop.permute.xlu1 %529 }
 0x39e   : > { %1186 = vpow2.f32 %v856_v50  ;;  %1118 = vmatpush3.msra.mxu0 %v530_v51 }
 0x39f   : > { %1127 = vmatprep.subr.mxu0 %v1218_v0 }
 0x3a0   : > { %v1183_v52 = vpop.eup %1182 }
 0x3a1   : > { %v524_v53 = vsel %vm265_vm1, %v1183_v52, 0.0 }
 0x3a2   : > { %525 = vadd.xlane.f32.xlu0 %v524_v53 }
 0x3a4   : > { %v1185_v54 = vpop.eup %1184 }
 0x3a5   : > { %v691_v55 = vsel %vm265_vm1, %v1185_v54, 0.0 }
 0x3a6   : > { %692 = vadd.xlane.f32.xlu1 %v691_v55 }
 0x3a8   : > { %v1187_v56 = vpop.eup %1186 }
 0x3a9   : > { %v858_v57 = vsel %vm265_vm1, %v1187_v56, 0.0 }
 0x3aa   : > { %859 = vadd.xlane.f32.xlu0 %v858_v57 }
 0x3b7   : > { %863 = vrot.lane.b32.xlu1 %v1305_v9, %s1225_s11 }
 0x3c0   : > { %696 = vrot.lane.b32.xlu0 %v1305_v9, %s1226_s12 }
 0x42f   : > { %v526_v58 = vpop.xlane.xlu0 %525 }
 0x430   : > { %1188 = vrcp.f32 %v526_v58 }
 0x433   : > { %v693_v59 = vpop.xlane.xlu1 %692 }
 0x434   : > { %1190 = vrcp.f32 %v693_v59 }
 0x437   : > { %v860_v60 = vpop.xlane.xlu0 %859  ;;  %v864_v3 = vpop.permute.xlu1 %863 }
 0x438   : > { %1192 = vrcp.f32 %v860_v60 }
 0x43a   : > { %v1189_v61 = vpop.eup %1188 }
 0x43b   : > { %v528_v62 = vmul.f32 %v1189_v61, %v1183_v52  ;;  %v697_v63 = vpop.permute.xlu0 %696 }
 0x43d   : > { %1120 = vmatmul.mubr.msk.f32.vlgmr.msra.gmra.mrb[2].mxu0 %vm265_vm1, %v528_v62 }
 0x43e   : > { %v1191_v1 = vpop.eup %1190  ;;  %1128 = vmatpush3.msra.mxu0 %v697_v63  ;;  %1129 = vmatprep.mubr.msk.f32.mxu0 %vm1219_vm0, %v1218_v0 }
 0x43f   : > { %v695_v2 = vmul.f32 %v1191_v1, %v1185_v54  ;;  %1137 = vmatprep.subr.mxu0 %v1218_v0 }
 0x441   : > { %1130 = vmatmul.mubr.msk.f32.vlgmr.msra.gmra.mrb[4].mxu0 %vm265_vm1, %v695_v2 }
 0x442   : > { %v1193_v4 = vpop.eup %1192  ;;  %1138 = vmatpush3.msra.mxu0 %v864_v3  ;;  %1139 = vmatprep.mubr.msk.f32.mxu0 %vm1219_vm0, %v1218_v0 }
 0x443   : > { %v862_v5 = vmul.f32 %v1193_v4, %v1187_v56 }
 0x445   : > { %1140 = vmatmul.mubr.msk.f32.vlgmr.msra.gmra.mrb[6].mxu0 %vm265_vm1, %v862_v5 }
 0x510   : > { %v601_v6 = vpop.f32.mrb[2].mxu0 }
 0x511   : > { %940 = vrot.lane.b32.xlu1 %v601_v6, %s1227_s13  ;;  %v1121_v7 = vpop.f32.mrb[3].mxu0 }
 0x514   : > { %v768_v8 = vpop.f32.mrb[4].mxu0 }
 0x515   : > { %944 = vrot.lane.b32.xlu0 %v768_v8, %s1228_s14  ;;  %v1131_v9 = vpop.f32.mrb[5].mxu0 }
 0x518   : > { %v935_v10 = vpop.f32.mrb[6].mxu0 }
 0x519   : > { %948 = vrot.lane.b32.xlu1 %v935_v10, %s1229_s15  ;;  %v1141_v11 = vpop.f32.mrb[7].mxu0 }
 0x583   : > { %v941_v12 = vpop.permute.xlu1 %940 }
 0x584   : > { %v951_v0 = vsel %vm265_vm1, %v1325_v25, %v941_v12 }
 0x587   : > { %v945_v13 = vpop.permute.xlu0 %944 }
 0x588   : > { %v953_v14 = vsel %vm952_vm2, %v951_v0, %v945_v13 }
 0x58b   : > { %v949_v15 = vpop.permute.xlu1 %948 }
 0x58c   : > { %v955_v16 = vsel %vm954_vm3, %v953_v14, %v949_v15 }
 0x58d   : > { %957 = vst.msk [vmem:[%s260_s22] sm:$0xff] %vm956_vm4, %v955_v16 }
 0x58e PF: > { %s14_s17 = sadd.s32 1, %s1216_s17   ;;  %s1368_s15 = smov %s1212_s16 }
 0x58f   : > { %p11_p5 = scmp.ge.s32.totalorder %s14_s17, 4   ;;  %s1369_s16 = smov %s1371_s18 }
 0x591   :  { %13 = sbr.rel (!%p11_p5) target bundleno = 2 (0x2), region = 75 }

// kernel: _lambda_.22
= control target key start
LH: loop header
LB: loop body
LE: loop exit
PB: predicated region body
PF: predicated region fallthrough
CT: control target
= control target key end

     0   :  { %vm28_vm0 = vcmask 261120   ;;  %s211_s1 = inlined_call_operand.vmem [shape: f32[32,128], index: 1, kind: input, shape index: {}]   ;;  %s212_s0 = inlined_call_operand.vmem [shape: f32[16,32], index: 0, kind: input, shape index: {}]   ;;  %s213_s2 = inlined_call_operand.vmem [shape: f32[1,128], index: 2, kind: input, shape index: {}]   ;;  %s214_s3 = inlined_call_operand.vmem [shape: f32[16,128], index: 3, kind: output, shape index: {}]  }
   0x1   :  { %v24_v0 = vld [vmem:[%s211_s1] sm:$0xff]  ;;  %v25_v1 = vld [vmem:[%s211_s1 + $0x8] sm:$0xff]  ;;  %v26_v2 = vld [vmem:[%s211_s1 + $0x10] sm:$0xff] }
   0x2   :  { %v156_v3 = vpack.c.bf16 %v25_v1, %v24_v0  ;;  %v27_v4 = vld [vmem:[%s211_s1 + $0x18] sm:$0xff]  ;;  %v22_v5 = vld [vmem:[%s212_s0] sm:$0xff]  ;;  %v23_v7 = vld [vmem:[%s212_s0 + $0x8] sm:$0xff] }
   0x3   :  { %v160_v6 = vpack.c.bf16 %v27_v4, %v26_v2  ;;  %153 = vmatprep.mubr.msk.f32.mxu0 %vm28_vm0, %v22_v5  ;;  %v138_v8 = vld [vmem:[%s213_s2] ss:$0 sm:$0xff] }
   0x4   :  { %157 = vmatprep.subr.bf16.mxu0 %v156_v3 }
   0x5   :  { %159 = vmatpush3.bf16.msra.mxu0 %v156_v3 }
   0x6   :  { %161 = vmatprep.subr.bf16.mxu0 %v160_v6 }
   0x9   :  { %163 = vmatpush3.bf16.msra.mxu0 %v160_v6 }
   0xc   :  { %154 = vmatmul.mubr.msk.f32.vlgmr.msra.gmra.mrb[0].mxu0 %vm28_vm0, %v23_v7 }
  0xdf   :  { %v155_v9 = vpop.f32.mrb[0].mxu0 }
  0xe0   :  { %v127_v10 = vadd.f32 %v155_v9, %v138_v8  ;;  %v101_v11 = vpop.f32.mrb[1].mxu0 }
  0xe1   :  { %v126_v12 = vadd.f32 %v138_v8, %v101_v11 }
  0xe2   :  { %v129_v13 = vmax.f32 %v127_v10, 0.0 }
  0xe3   :  { %v128_v14 = vmax.f32 %v126_v12, 0.0 }
  0xe4   :  { %131 = vst [vmem:[%s214_s3 + $0x8] sm:$0xff] %v129_v13 }
  0xe5   :  { %130 = vst [vmem:[%s214_s3] sm:$0xff] %v128_v14 }

// kernel: _lambda_.23
= control target key start
LH: loop header
LB: loop body
LE: loop exit
PB: predicated region body
PF: predicated region fallthrough
CT: control target
= control target key end

     0   :  { %vm22_vm0 = vcmask 261120   ;;  %v275_v5 = vmov 0.0   ;;  %s385_s0 = inlined_call_operand.vmem [shape: f32[16,128], index: 0, kind: input, shape index: {}]   ;;  %s386_s1 = inlined_call_operand.vmem [shape: f32[128,32], index: 1, kind: input, shape index: {}]   ;;  %s387_s2 = inlined_call_operand.vmem [shape: f32[1,32], index: 2, kind: input, shape index: {}]   ;;  %s388_s3 = inlined_call_operand.vmem [shape: f32[16,32], index: 3, kind: input, shape index: {}]   ;;  %s389_s4 = inlined_call_operand.hbm [shape: f32[16,32], index: 4, kind: output, shape index: {}]  }
   0x1   :  { %v29_v0 = vld [vmem:[%s386_s1] sm:$0xff]  ;;  %v30_v1 = vld [vmem:[%s386_s1 + $0x8] sm:$0xff]  ;;  %v31_v2 = vld [vmem:[%s386_s1 + $0x10] sm:$0xff]  ;;  %24 = vst.msk [vmem:[#allocation2 + $0x8] sm:$0xff] %vm22_vm0, %v275_v5 }
   0x2   :  { %v215_v3 = vpack.c.bf16 %v30_v1, %v29_v0  ;;  %v32_v4 = vld [vmem:[%s386_s1 + $0x18] sm:$0xff]  ;;  %23 = vst.msk [vmem:[#allocation2] sm:$0xff] %vm22_vm0, %v275_v5  ;;  %v33_v7 = vld [vmem:[%s386_s1 + $0x20] sm:$0xff]  ;;  %v34_v8 = vld [vmem:[%s386_s1 + $0x28] sm:$0xff] }
   0x3   :  { %v219_v6 = vpack.c.bf16 %v32_v4, %v31_v2  ;;  %v223_v9 = vpack.c.bf16 %v34_v8, %v33_v7  ;;  %v27_v10 = vld [vmem:[%s385_s0] sm:$0xff]  ;;  %v35_v11 = vld [vmem:[%s386_s1 + $0x30] sm:$0xff]  ;;  %v36_v12 = vld [vmem:[%s386_s1 + $0x38] sm:$0xff] }
   0x4   :  { %216 = vmatprep.subr.bf16.mxu0 %v215_v3  ;;  %212 = vmatprep.mubr.f32.mxu0 %v27_v10 }
   0x5   :  { %218 = vmatpush3.bf16.msra.mxu0 %v215_v3 }
   0x6   :  { %220 = vmatprep.subr.bf16.mxu0 %v219_v6 }
   0x7   :  { %9 = vsyncpa [#allocation4], 0  ;;  %v227_v13 = vpack.c.bf16 %v36_v12, %v35_v11  ;;  %v37_v14 = vld [vmem:[%s386_s1 + $0x40] sm:$0xff]  ;;  %v38_v15 = vld [vmem:[%s386_s1 + $0x48] sm:$0xff] }
   0x8   :  { %v231_v16 = vpack.c.bf16 %v38_v15, %v37_v14  ;;  %v39_v17 = vld [vmem:[%s386_s1 + $0x50] sm:$0xff]  ;;  %v40_v18 = vld [vmem:[%s386_s1 + $0x58] sm:$0xff]  ;;  %v41_v20 = vld [vmem:[%s386_s1 + $0x60] sm:$0xff] }
   0x9   :  { %222 = vmatpush3.bf16.msra.mxu0 %v219_v6  ;;  %v235_v19 = vpack.c.bf16 %v40_v18, %v39_v17  ;;  %v42_v21 = vld [vmem:[%s386_s1 + $0x68] sm:$0xff]  ;;  %v43_v23 = vld [vmem:[%s386_s1 + $0x70] sm:$0xff]  ;;  %v44_v24 = vld [vmem:[%s386_s1 + $0x78] sm:$0xff] }
   0xa   :  { %224 = vmatprep.subr.bf16.mxu0 %v223_v9  ;;  %v239_v22 = vpack.c.bf16 %v42_v21, %v41_v20  ;;  %v243_v25 = vpack.c.bf16 %v44_v24, %v43_v23  ;;  %v28_v26 = vld [vmem:[%s385_s0 + $0x8] sm:$0xff]  ;;  %v25_v28 = vld [vmem:[#allocation2] sm:$0xff]  ;;  %s276_s0 = smov [#allocation3]  }
   0xb   :  { %v26_v27 = vld [vmem:[#allocation2 + $0x8] sm:$0xff]  ;;  %v161_v33 = vld [vmem:[%s387_s2] ss:$0 sm:$0xff]  ;;  %s150_s28 = sshll.u32 %s276_s0, 4  ;;  %s151_s28 = int_to_ptr.vmem [resolvable:$true] %s150_s28 }
   0xc   :  { %v140_v35 = vld [vmem:[%s388_s3 + $0x8] sm:$0xff]  ;;  %v139_v38 = vld [vmem:[%s388_s3] sm:$0xff]  ;;  %s251_s2 = scalar_lea.vmem %s151_s28, 256  ;;  %p256_p1 = scmp.lt.s32.totalorder %s151_s28, %s151_s28 }
   0xd   :  { %226 = vmatpush3.bf16.msra.mxu0 %v223_v9  ;;  %p252_p0 = scmp.ne.s32.totalorder %s151_s28, %s251_s2  ;;  %p257_p2 = scmp.lt.s32.totalorder %s251_s2, %s251_s2 }
   0xe   :  { %228 = vmatprep.subr.bf16.mxu0 %v227_v13 }
   0xf   :  { %p258_p3 = por %p257_p2, %p256_p1 }
  0x11   :  { %230 = vmatpush3.bf16.msra.mxu0 %v227_v13  ;;  %p259_p4 = pnand %p258_p3, %p252_p0 }
  0x12   :  { %232 = vmatprep.subr.bf16.mxu0 %v231_v16 }
  0x15   :  { %234 = vmatpush3.bf16.msra.mxu0 %v231_v16 }
  0x16   :  { %236 = vmatprep.subr.bf16.mxu0 %v235_v19 }
  0x19   :  { %238 = vmatpush3.bf16.msra.mxu0 %v235_v19 }
  0x1a   :  { %240 = vmatprep.subr.bf16.mxu0 %v239_v22 }
  0x1d   :  { %242 = vmatpush3.bf16.msra.mxu0 %v239_v22 }
  0x1e   :  { %244 = vmatprep.subr.bf16.mxu0 %v243_v25 }
  0x21   :  { %246 = vmatpush3.bf16.msra.mxu0 %v243_v25 }
  0x24   :  { %213 = vmatmul.mubr.f32.vlgmr.msra.gmra.mrb[0].mxu0 %v28_v26 }
  0xf7   :  { %v214_v29 = vpop.f32.mrb[0].mxu0 }
  0xf8   :  { %v121_v30 = vadd.f32 %v214_v29, %v26_v27  ;;  %v111_v31 = vpop.f32.mrb[1].mxu0 }
  0xf9   :  { %v120_v32 = vadd.f32 %v111_v31, %v25_v28 }
  0xfa   :  { %124 = vst.msk [vmem:[#allocation2 + $0x8] sm:$0xff] %vm22_vm0, %v121_v30 }
  0xfb   :  { %123 = vst.msk [vmem:[#allocation2] sm:$0xff] %vm22_vm0, %v120_v32 }
 0x101   :  { %v129_v34 = vld [vmem:[#allocation2 + $0x8] sm:$0xff] }
 0x102   :  { %v128_v36 = vld [vmem:[#allocation2] sm:$0xff]  ;;  %v138_v37 = vadd.f32 %v161_v33, %v129_v34 }
 0x103   :  { %v137_v39 = vadd.f32 %v161_v33, %v128_v36 }
 0x104   :  { %v142_v40 = vadd.f32 %v140_v35, %v138_v37 }
 0x105   :  { %v141_v41 = vadd.f32 %v139_v38, %v137_v39 }
 0x106   :  { %144 = vst.msk [vmem:[#allocation3 + $0x8] sm:$0xff] %vm22_vm0, %v142_v40 }
 0x107   :  { %143 = vst.msk [vmem:[#allocation3] sm:$0xff] %vm22_vm0, %v141_v41 }
 0x108   :  { %262 = shalt.err (!%p259_p4)
}
 0x109   :  { %s263_s7 = scalar_lea.hbm %s389_s4, 256 }
 0x10a   :  { %p264_p5 = scmp.ne.s32.totalorder %s389_s4, %s263_s7  ;;  %p267_p6 = scmp.lt.u32.totalorder %s263_s7, %s389_s4 }
 0x10c   :  { %p269_p7 = pnand %p267_p6, %p264_p5 }
 0x10e   :  { %272 = shalt.err (!%p269_p7)
}
 0x10f   :  { %s277_s11 = smov 128   ;;  %s278_s12 = smov 8  }
 0x110   :  { %156 = dma.vmem_to_hbm [thread:$0]  %s151_s28, 256, %s389_s4, [#allocation4], %s277_s11, %s277_s11, %s278_s12  }
 0x111   :  { %273 = dma.done.wait [#allocation4], 256  }
 0x112   :  { %274 = vsyncadd [#allocation4], 4294967040 }
 0x113   :  { %160 = vsyncpa [#allocation4], 1 }

</bundles_post_ra>
